<compile_context>
chip_gen: v5e
topology: v5e:2x2
jax: 0.10.0
libtpu: 0.0.40
codegen_flags: <defaults>
</compile_context>

<pallas_src>
import functools

import numpy as np
import jax
import jax.numpy as jnp
from jax import lax
from jax.experimental import pallas as pl
from jax.experimental.pallas import tpu as pltpu

# Explicit scoped-VMEM ceiling: safe on v5e/v6e (128 MiB phys) and v7x (64 MiB).
_VMEM_LIMIT = 48 * 1024 * 1024


def _pick_hw_tile(hw):
    """Largest lane-dense tile (multiple of 128) that divides HW."""
    for t in (2048, 1024, 512, 256, 128):
        if hw % t == 0:
            return t
    return hw


def _bias2d(b, cout, dtype):
    return (jnp.zeros((cout,), dtype) if b is None else b).reshape(cout, 1)


# ----------------------------- 1x1 (pointwise) conv -----------------------------
def _pconv_kernel(x_ref, w_ref, b_ref, o_ref):
    x = x_ref[0].astype(jnp.float32)             # (Cin, t)
    w = w_ref[...].astype(jnp.float32)           # (Cout, Cin)
    b = b_ref[...].astype(jnp.float32)           # (Cout, 1)
    o_ref[0] = (jnp.dot(w, x, preferred_element_type=jnp.float32) + b).astype(o_ref.dtype)


def pointwise_conv(x, w, b):
    """x: (B, Cin, HW), w: (Cout, Cin), b: (Cout,)|None -> (B, Cout, HW)."""
    B, Cin, HW = x.shape
    Cout = w.shape[0]
    t = _pick_hw_tile(HW)
    return pl.pallas_call(
        _pconv_kernel,
        out_shape=jax.ShapeDtypeStruct((B, Cout, HW), x.dtype),
        grid=(B, HW // t),
        in_specs=[
            pl.BlockSpec((1, Cin, t), lambda i, j: (i, 0, j)),
            pl.BlockSpec((Cout, Cin), lambda i, j: (0, 0)),
            pl.BlockSpec((Cout, 1), lambda i, j: (0, 0)),
        ],
        out_specs=pl.BlockSpec((1, Cout, t), lambda i, j: (i, 0, j)),
        compiler_params=pltpu.CompilerParams(
            dimension_semantics=("parallel", "parallel"),
            vmem_limit_bytes=_VMEM_LIMIT),
    )(x, w, _bias2d(b, Cout, x.dtype))


# --------------- fused 1x1 conv over three inputs (replaces the concat) ---------------
def _pconv3_kernel(x3_ref, x5_ref, x7_ref, w3_ref, w5_ref, w7_ref, b_ref, o_ref):
    acc = jnp.dot(w3_ref[...].astype(jnp.float32), x3_ref[0].astype(jnp.float32),
                  preferred_element_type=jnp.float32)
    acc = acc + jnp.dot(w5_ref[...].astype(jnp.float32), x5_ref[0].astype(jnp.float32),
                        preferred_element_type=jnp.float32)
    acc = acc + jnp.dot(w7_ref[...].astype(jnp.float32), x7_ref[0].astype(jnp.float32),
                        preferred_element_type=jnp.float32)
    o_ref[0] = (acc + b_ref[...].astype(jnp.float32)).astype(o_ref.dtype)


def fused_pconv3(x3, x5, x7, w3, w5, w7, b):
    """Computes w3@x3 + w5@x5 + w7@x7 + b without materializing the concat."""
    B, Cin, HW = x3.shape
    Cout = w3.shape[0]
    t = _pick_hw_tile(HW)
    xspec = pl.BlockSpec((1, Cin, t), lambda i, j: (i, 0, j))
    wspec = pl.BlockSpec((Cout, Cin), lambda i, j: (0, 0))
    return pl.pallas_call(
        _pconv3_kernel,
        out_shape=jax.ShapeDtypeStruct((B, Cout, HW), x3.dtype),
        grid=(B, HW // t),
        in_specs=[xspec, xspec, xspec, wspec, wspec, wspec,
                  pl.BlockSpec((Cout, 1), lambda i, j: (0, 0))],
        out_specs=pl.BlockSpec((1, Cout, t), lambda i, j: (i, 0, j)),
        compiler_params=pltpu.CompilerParams(
            dimension_semantics=("parallel", "parallel"),
            vmem_limit_bytes=_VMEM_LIMIT),
    )(x3, x5, x7, w3, w5, w7, _bias2d(b, Cout, x3.dtype))


# ------------------------------ depthwise convs ------------------------------
def depthwise_conv(x, w, b):
    """x: (B, C, H, W), w: (C, 1, k, k), b: (C,)|None. Stride 1, SAME pad."""
    # TODO(synk): grouped KxK depthwise convs need halo exchange between spatial
    # tiles (no clean rectangular BlockSpec); left to XLA. Longer term: in-kernel
    # pltpu.roll along lanes (W) + sublane shifts (H), fused with the pconvs.
    y = lax.conv_general_dilated(
        x, w, window_strides=(1, 1), padding="SAME",
        feature_group_count=x.shape[1],
        dimension_numbers=("NCHW", "OIHW", "NCHW"))
    if b is not None:
        y = y + b[None, :, None, None]
    return y


# ------------------------- fused top-k channel attention -------------------------
def _attn_kernel(qkv_ref, temp_ref, bw_ref, o_ref, *, num_heads, top_ks, mxu_bf16):
    C3, HW = qkv_ref.shape[1], qkv_ref.shape[2]
    c = C3 // (3 * num_heads)
    eps2 = jnp.float32(1e-24)
    lane_ids = lax.broadcasted_iota(jnp.int32, (c, c), 1)   # hoisted out of head loop

    for h in range(num_heads):                   # all heads of one batch per grid step
        base = h * 3 * c                         # channels are [q_h | k_h | v_h] blocks
        q = qkv_ref[0, base:base + c, :].astype(jnp.float32)            # (c, HW)
        k = qkv_ref[0, base + c:base + 2 * c, :].astype(jnp.float32)    # (c, HW)
        v = qkv_ref[0, base + 2 * c:base + 3 * c, :].astype(jnp.float32)

        # F.normalize(dim=-1, eps=1e-12): x / max(||x||, eps)
        qn = q * lax.rsqrt(jnp.maximum(jnp.sum(q * q, axis=-1, keepdims=True), eps2))
        kn = k * lax.rsqrt(jnp.maximum(jnp.sum(k * k, axis=-1, keepdims=True), eps2))

        qn_m = qn.astype(jnp.bfloat16) if mxu_bf16 else qn
        kn_m = kn.astype(jnp.bfloat16) if mxu_bf16 else kn
        temp = temp_ref[h].astype(jnp.float32)
        attn = lax.dot_general(
            qn_m, kn_m, dimension_numbers=(((1,), (1,)), ((), ())),
            preferred_element_type=jnp.float32) * temp                  # (c, c) f32

        # rank[i, j] = #entries in row i strictly greater than attn[i, j]
        # (== torch.topk + scatter mask for untied floats), (c, c) working set.
        def rank_body(m_idx, rk):
            col = jnp.sum(jnp.where(lane_ids == m_idx, attn, 0.0),
                          axis=-1, keepdims=True)                       # attn[:, m_idx]
            return rk + (col > attn).astype(jnp.float32)
        rank = lax.fori_loop(0, c, rank_body, jnp.zeros((c, c), jnp.float32),
                             unroll=(c <= 16))

        # Hoisted softmax pieces: the row max always survives every top-k mask,
        # so one max / one exp serves all three branches (exact).
        m = jnp.max(attn, axis=-1, keepdims=True)
        e_all = jnp.exp(attn - m)

        # Combine branch probabilities before the second matmul (exact by linearity).
        p_comb = jnp.zeros((c, c), jnp.float32)
        for i, kk in enumerate(top_ks):          # 3 branches, statically unrolled
            e = jnp.where(rank < jnp.float32(kk), e_all, 0.0)
            inv = pl.reciprocal(jnp.sum(e, axis=-1, keepdims=True), approx=True)
            p_comb = p_comb + bw_ref[i].astype(jnp.float32) * (e * inv)

        if mxu_bf16:
            out_h = jnp.dot(p_comb.astype(jnp.bfloat16), v.astype(jnp.bfloat16),
                            preferred_element_type=jnp.float32)
        else:
            out_h = jnp.dot(p_comb, v, preferred_element_type=jnp.float32)
        o_ref[0, h * c:(h + 1) * c, :] = out_h.astype(o_ref.dtype)


def topk_channel_attention(qkv, temperature, branch_w, *, num_heads, top_ks,
                           mxu_bf16=False):
    """qkv: (B, 3*dim, HW) with head-interleaved channels [q_h|k_h|v_h per head]."""
    B, C3, HW = qkv.shape
    dim = C3 // 3
    kernel = functools.partial(_attn_kernel, num_heads=num_heads,
                               top_ks=tuple(int(t) for t in top_ks),
                               mxu_bf16=mxu_bf16)
    return pl.pallas_call(
        kernel,
        out_shape=jax.ShapeDtypeStruct((B, dim, HW), qkv.dtype),
        grid=(B,),
        in_specs=[
            pl.BlockSpec((1, C3, HW), lambda b: (b, 0, 0)),              # one DMA/step
            pl.BlockSpec(memory_space=pltpu.MemorySpace.SMEM),           # temperature
            pl.BlockSpec(memory_space=pltpu.MemorySpace.SMEM),           # branch weights
        ],
        out_specs=pl.BlockSpec((1, dim, HW), lambda b: (b, 0, 0)),
        compiler_params=pltpu.CompilerParams(
            dimension_semantics=("parallel",),
            vmem_limit_bytes=_VMEM_LIMIT),
    )(qkv, temperature, branch_w)


# --------------------------------- full forward ---------------------------------
def _head_interleave_perm(dim, num_heads):
    """Row permutation of w_pconv so q/k/v of a head occupy adjacent channels."""
    c = dim // num_heads
    blocks = []
    for h in range(num_heads):
        for s in range(3):                       # q, k, v
            blocks.append(s * dim + h * c + np.arange(c))
    return np.concatenate(blocks)


def attention_forward(x, params, *, num_heads, mxu_bf16=False):
    """Pallas/JAX equivalent of Attention.forward. x: (B, dim, H, W) NCHW."""
    B, dim, H, W = x.shape
    HW = H * W
    c = dim // num_heads
    top_ks = (int(c / 2), int(c * 2 / 3), int(c * 3 / 4))

    x3 = x.reshape(B, dim, HW)                                        # free reshape
    qkv_x = pointwise_conv(x3, params["w_qkv"], params["b_qkv"])      # (B, 3*dim, HW)
    qkv_x4 = qkv_x.reshape(B, 3 * dim, H, W)
    d3 = depthwise_conv(qkv_x4, params["w_dw3"], params["b_dw3"]).reshape(B, 3 * dim, HW)
    d5 = depthwise_conv(qkv_x4, params["w_dw5"], params["b_dw5"]).reshape(B, 3 * dim, HW)
    d7 = depthwise_conv(qkv_x4, params["w_dw7"], params["b_dw7"]).reshape(B, 3 * dim, HW)

    # One-time (parameter-prep) row permutation + column split of w_pconv:
    # output channels come out head-interleaved, and the concat round trip of
    # the 9*dim tensor is eliminated (three operands summed in-kernel).
    perm = _head_interleave_perm(dim, num_heads)
    w_p = params["w_pconv"][perm]
    b_p = params["b_pconv"]
    b_p = (jnp.zeros((3 * dim,), x.dtype) if b_p is None else b_p)[perm]
    qkv = fused_pconv3(d3, d5, d7,
                       w_p[:, :3 * dim], w_p[:, 3 * dim:6 * dim], w_p[:, 6 * dim:],
                       b_p)                                           # (B, 3*dim, HW)

    out = topk_channel_attention(qkv, params["temperature"], params["attn_w"],
                                 num_heads=num_heads, top_ks=top_ks,
                                 mxu_bf16=mxu_bf16)                   # (B, dim, HW)
    out = pointwise_conv(out, params["w_proj"], params["b_proj"])     # (B, dim, HW)
    return out.reshape(B, dim, H, W)


# ----------------------- pure-JAX reference (PyTorch semantics) -----------------------
def _ref_forward(x, p, num_heads):
    B, dim, H, W = x.shape
    HW = H * W
    c = dim // num_heads

    def pconv(t, w, b):
        return jnp.einsum("oc,bchw->bohw", w, t) + b[None, :, None, None]

    qx = pconv(x, p["w_qkv"], p["b_qkv"])
    qkv = jnp.concatenate(
        [depthwise_conv(qx, p["w_dw3"], p["b_dw3"]),
         depthwise_conv(qx, p["w_dw5"], p["b_dw5"]),
         depthwise_conv(qx, p["w_dw7"], p["b_dw7"])], axis=1)
    qkv = pconv(qkv, p["w_pconv"], p["b_pconv"])
    q, k, v = jnp.split(qkv, 3, axis=1)
    q = q.reshape(B, num_heads, c, HW)
    k = k.reshape(B, num_heads, c, HW)
    v = v.reshape(B, num_heads, c, HW)
    q = q / jnp.maximum(jnp.linalg.norm(q, axis=-1, keepdims=True), 1e-12)
    k = k / jnp.maximum(jnp.linalg.norm(k, axis=-1, keepdims=True), 1e-12)
    attn = jnp.einsum("bhip,bhjp->bhij", q, k) * p["temperature"][None, :, None, None]
    outs = []
    for kk in (int(c / 2), int(c * 2 / 3), int(c * 3 / 4)):
        idx = lax.top_k(attn, kk)[1]                                   # (B, h, c, kk)
        keep = jnp.any(idx[..., None] == jnp.arange(c)[None, None, None, None, :],
                       axis=-2)                                        # (B, h, c, c)
        masked = jnp.where(keep, attn, -jnp.inf)
        soft = jax.nn.softmax(masked, axis=-1)
        outs.append(jnp.einsum("bhij,bhjp->bhip", soft, v))
    out = sum(w * o for w, o in zip(p["attn_w"], outs))
    out = out.reshape(B, dim, H, W)
    return pconv(out, p["w_proj"], p["b_proj"])


if __name__ == "__main__":
    B, dim, num_heads, H, W = 2, 16, 2, 16, 16          # c = 8, HW = 256 (lane-dense)
    key = jax.random.PRNGKey(0)
    ks = jax.random.split(key, 13)

    def nrm(k, shape, scale):
        return (scale * jax.random.normal(k, shape)).astype(jnp.float32)

    params = dict(
        w_qkv=nrm(ks[0], (3 * dim, dim), 0.25),
        b_qkv=nrm(ks[1], (3 * dim,), 0.10),
        w_dw3=nrm(ks[2], (3 * dim, 1, 3, 3), 0.30),
        b_dw3=nrm(ks[3], (3 * dim,), 0.05),
        w_dw5=nrm(ks[4], (3 * dim, 1, 5, 5), 0.15),
        b_dw5=nrm(ks[5], (3 * dim,), 0.05),
        w_dw7=nrm(ks[6], (3 * dim, 1, 7, 7), 0.10),
        b_dw7=nrm(ks[7], (3 * dim,), 0.05),
        w_pconv=nrm(ks[8], (3 * dim, 9 * dim), 0.10),
        b_pconv=nrm(ks[9], (3 * dim,), 0.05),
        w_proj=nrm(ks[10], (dim, dim), 0.25),
        b_proj=nrm(ks[11], (dim,), 0.05),
        temperature=1.0 + 0.1 * jnp.arange(num_heads, dtype=jnp.float32),
        attn_w=jnp.array([0.2, 0.25, 0.3], dtype=jnp.float32),
    )
    x = nrm(ks[12], (B, dim, H, W), 1.0)

    fwd = jax.jit(functools.partial(attention_forward, num_heads=num_heads))
    out = jax.block_until_ready(fwd(x, params))
    ref = _ref_forward(x, params, num_heads)

    assert out.shape == (B, dim, H, W)
    err = float(jnp.max(jnp.abs(out - ref)))
    # Tolerance accounts for the EUP approx reciprocal (~2^-12 relative) in the
    # per-branch softmax denominators; any structural bug would be O(0.1)+.
    assert jnp.allclose(out, ref, atol=2e-3, rtol=2e-3), f"max abs err {err}"

    # bf16-MXU-operand variant (v6e/v7x fast path). Top-k mask membership can
    # shift near the threshold with quantized attn, so only a loose sanity check.
    fwd_bf16 = jax.jit(functools.partial(attention_forward, num_heads=num_heads,
                                         mxu_bf16=True))
    out_bf16 = jax.block_until_ready(fwd_bf16(x, params))
    assert out_bf16.shape == (B, dim, H, W)
    assert bool(jnp.all(jnp.isfinite(out_bf16)))
    assert float(jnp.mean(jnp.abs(out_bf16 - ref))) < 0.1
    print("KERNEL_OK")
</pallas_src>

<mosaic_0001>
module attributes {stable_mosaic.version = 11 : i64} {
  func.func @_pconv_kernel(%arg0: i32, %arg1: i32, %arg2: memref<1x16x256xf32, #tpu.memory_space<vmem>>, %arg3: memref<48x16xf32, #tpu.memory_space<vmem>>, %arg4: memref<48x1xf32, #tpu.memory_space<vmem>>, %arg5: memref<1x48x256xf32, #tpu.memory_space<vmem>>) attributes {dimension_semantics = [#tpu.dimension_semantics<parallel>, #tpu.dimension_semantics<parallel>], iteration_bounds = array<i64: 2, 1>, scalar_prefetch = 0 : i64, scratch_operands = 0 : i64, tpu.core_type = #tpu.core_type<tc>, window_params = [{transform_indices = @transform_0, window_bounds = array<i64: 1, 16, 256>}, {pipeline_mode = #tpu.pipeline_mode<synchronous>, transform_indices = @transform_1, window_bounds = array<i64: 48, 16>}, {pipeline_mode = #tpu.pipeline_mode<synchronous>, transform_indices = @transform_2, window_bounds = array<i64: 48, 1>}, {transform_indices = @transform_3, window_bounds = array<i64: 1, 48, 256>}]} {
    %c0 = arith.constant 0 : index
    %c0_0 = arith.constant 0 : index
    %c0_1 = arith.constant 0 : index
    %0 = vector.load %arg2[%c0, %c0_0, %c0_1] : memref<1x16x256xf32, #tpu.memory_space<vmem>>, vector<1x16x256xf32>
    %1 = vector.shape_cast %0 : vector<1x16x256xf32> to vector<16x256xf32>
    %c0_2 = arith.constant 0 : index
    %c0_3 = arith.constant 0 : index
    %2 = vector.load %arg3[%c0_2, %c0_3] : memref<48x16xf32, #tpu.memory_space<vmem>>, vector<48x16xf32>
    %c0_4 = arith.constant 0 : index
    %c0_5 = arith.constant 0 : index
    %3 = vector.load %arg4[%c0_4, %c0_5] : memref<48x1xf32, #tpu.memory_space<vmem>>, vector<48x1xf32>
    %cst = arith.constant dense<0.000000e+00> : vector<48x256xf32>
    %4 = tpu.matmul %2, %1, %cst {dimension_numbers = #tpu.dot_dimension_numbers<[1], [0], [0], [1], [0, 0, 1, 1], [], []>} : vector<48x16xf32>, vector<16x256xf32>, vector<48x256xf32> -> vector<48x256xf32>
    %5 = vector.broadcast %3 : vector<48x1xf32> to vector<48x256xf32>
    %6 = arith.addf %4, %5 : vector<48x256xf32>
    %c0_6 = arith.constant 0 : index
    %c0_7 = arith.constant 0 : index
    %c0_8 = arith.constant 0 : index
    %7 = vector.load %arg5[%c0_6, %c0_7, %c0_8] : memref<1x48x256xf32, #tpu.memory_space<vmem>>, vector<1x48x256xf32>
    %8 = vector.shape_cast %7 : vector<1x48x256xf32> to vector<48x256xf32>
    %9 = vector.shape_cast %6 : vector<48x256xf32> to vector<1x48x256xf32>
    tpu.vector_store %arg5[%c0_6, %c0_7, %c0_8], %9 {strides = array<i32>} : memref<1x48x256xf32, #tpu.memory_space<vmem>>, vector<1x48x256xf32>,
    return
  }
  func.func @transform_0(%arg0: i32, %arg1: i32) -> (i32, i32, i32) {
    %c0_i32 = arith.constant 0 : i32
    %c0_i32_0 = arith.constant 0 : i32
    return %arg0, %c0_i32, %arg1 : i32, i32, i32
  }
  func.func @transform_1(%arg0: i32, %arg1: i32) -> (i32, i32) {
    %c0_i32 = arith.constant 0 : i32
    %c0_i32_0 = arith.constant 0 : i32
    %c0_i32_1 = arith.constant 0 : i32
    return %c0_i32, %c0_i32_0 : i32, i32
  }
  func.func @transform_2(%arg0: i32, %arg1: i32) -> (i32, i32) {
    %c0_i32 = arith.constant 0 : i32
    %c0_i32_0 = arith.constant 0 : i32
    %c0_i32_1 = arith.constant 0 : i32
    return %c0_i32, %c0_i32_0 : i32, i32
  }
  func.func @transform_3(%arg0: i32, %arg1: i32) -> (i32, i32, i32) {
    %c0_i32 = arith.constant 0 : i32
    %c0_i32_0 = arith.constant 0 : i32
    return %arg0, %c0_i32, %arg1 : i32, i32, i32
  }
}

module attributes {stable_mosaic.version = 11 : i64} {
  func.func @_pconv3_kernel(%arg0: i32, %arg1: i32, %arg2: memref<1x48x256xf32, #tpu.memory_space<vmem>>, %arg3: memref<1x48x256xf32, #tpu.memory_space<vmem>>, %arg4: memref<1x48x256xf32, #tpu.memory_space<vmem>>, %arg5: memref<48x48xf32, #tpu.memory_space<vmem>>, %arg6: memref<48x48xf32, #tpu.memory_space<vmem>>, %arg7: memref<48x48xf32, #tpu.memory_space<vmem>>, %arg8: memref<48x1xf32, #tpu.memory_space<vmem>>, %arg9: memref<1x48x256xf32, #tpu.memory_space<vmem>>) attributes {dimension_semantics = [#tpu.dimension_semantics<parallel>, #tpu.dimension_semantics<parallel>], iteration_bounds = array<i64: 2, 1>, scalar_prefetch = 0 : i64, scratch_operands = 0 : i64, tpu.core_type = #tpu.core_type<tc>, window_params = [{transform_indices = @transform_0, window_bounds = array<i64: 1, 48, 256>}, {transform_indices = @transform_1, window_bounds = array<i64: 1, 48, 256>}, {transform_indices = @transform_2, window_bounds = array<i64: 1, 48, 256>}, {pipeline_mode = #tpu.pipeline_mode<synchronous>, transform_indices = @transform_3, window_bounds = array<i64: 48, 48>}, {pipeline_mode = #tpu.pipeline_mode<synchronous>, transform_indices = @transform_4, window_bounds = array<i64: 48, 48>}, {pipeline_mode = #tpu.pipeline_mode<synchronous>, transform_indices = @transform_5, window_bounds = array<i64: 48, 48>}, {pipeline_mode = #tpu.pipeline_mode<synchronous>, transform_indices = @transform_6, window_bounds = array<i64: 48, 1>}, {transform_indices = @transform_7, window_bounds = array<i64: 1, 48, 256>}]} {
    %c0 = arith.constant 0 : index
    %c0_0 = arith.constant 0 : index
    %0 = vector.load %arg5[%c0, %c0_0] : memref<48x48xf32, #tpu.memory_space<vmem>>, vector<48x48xf32>
    %c0_1 = arith.constant 0 : index
    %c0_2 = arith.constant 0 : index
    %c0_3 = arith.constant 0 : index
    %1 = vector.load %arg2[%c0_1, %c0_2, %c0_3] : memref<1x48x256xf32, #tpu.memory_space<vmem>>, vector<1x48x256xf32>
    %2 = vector.shape_cast %1 : vector<1x48x256xf32> to vector<48x256xf32>
    %cst = arith.constant dense<0.000000e+00> : vector<48x256xf32>
    %3 = tpu.matmul %0, %2, %cst {dimension_numbers = #tpu.dot_dimension_numbers<[1], [0], [0], [1], [0, 0, 1, 1], [], []>} : vector<48x48xf32>, vector<48x256xf32>, vector<48x256xf32> -> vector<48x256xf32>
    %c0_4 = arith.constant 0 : index
    %c0_5 = arith.constant 0 : index
    %4 = vector.load %arg6[%c0_4, %c0_5] : memref<48x48xf32, #tpu.memory_space<vmem>>, vector<48x48xf32>
    %c0_6 = arith.constant 0 : index
    %c0_7 = arith.constant 0 : index
    %c0_8 = arith.constant 0 : index
    %5 = vector.load %arg3[%c0_6, %c0_7, %c0_8] : memref<1x48x256xf32, #tpu.memory_space<vmem>>, vector<1x48x256xf32>
    %6 = vector.shape_cast %5 : vector<1x48x256xf32> to vector<48x256xf32>
    %cst_9 = arith.constant dense<0.000000e+00> : vector<48x256xf32>
    %7 = tpu.matmul %4, %6, %cst_9 {dimension_numbers = #tpu.dot_dimension_numbers<[1], [0], [0], [1], [0, 0, 1, 1], [], []>} : vector<48x48xf32>, vector<48x256xf32>, vector<48x256xf32> -> vector<48x256xf32>
    %8 = arith.addf %3, %7 : vector<48x256xf32>
    %c0_10 = arith.constant 0 : index
    %c0_11 = arith.constant 0 : index
    %9 = vector.load %arg7[%c0_10, %c0_11] : memref<48x48xf32, #tpu.memory_space<vmem>>, vector<48x48xf32>
    %c0_12 = arith.constant 0 : index
    %c0_13 = arith.constant 0 : index
    %c0_14 = arith.constant 0 : index
    %10 = vector.load %arg4[%c0_12, %c0_13, %c0_14] : memref<1x48x256xf32, #tpu.memory_space<vmem>>, vector<1x48x256xf32>
    %11 = vector.shape_cast %10 : vector<1x48x256xf32> to vector<48x256xf32>
    %cst_15 = arith.constant dense<0.000000e+00> : vector<48x256xf32>
    %12 = tpu.matmul %9, %11, %cst_15 {dimension_numbers = #tpu.dot_dimension_numbers<[1], [0], [0], [1], [0, 0, 1, 1], [], []>} : vector<48x48xf32>, vector<48x256xf32>, vector<48x256xf32> -> vector<48x256xf32>
    %13 = arith.addf %8, %12 : vector<48x256xf32>
    %c0_16 = arith.constant 0 : index
    %c0_17 = arith.constant 0 : index
    %14 = vector.load %arg8[%c0_16, %c0_17] : memref<48x1xf32, #tpu.memory_space<vmem>>, vector<48x1xf32>
    %15 = vector.broadcast %14 : vector<48x1xf32> to vector<48x256xf32>
    %16 = arith.addf %13, %15 : vector<48x256xf32>
    %c0_18 = arith.constant 0 : index
    %c0_19 = arith.constant 0 : index
    %c0_20 = arith.constant 0 : index
    %17 = vector.load %arg9[%c0_18, %c0_19, %c0_20] : memref<1x48x256xf32, #tpu.memory_space<vmem>>, vector<1x48x256xf32>
    %18 = vector.shape_cast %17 : vector<1x48x256xf32> to vector<48x256xf32>
    %19 = vector.shape_cast %16 : vector<48x256xf32> to vector<1x48x256xf32>
    tpu.vector_store %arg9[%c0_18, %c0_19, %c0_20], %19 {strides = array<i32>} : memref<1x48x256xf32, #tpu.memory_space<vmem>>, vector<1x48x256xf32>,
    return
  }
  func.func @transform_0(%arg0: i32, %arg1: i32) -> (i32, i32, i32) {
    %c0_i32 = arith.constant 0 : i32
    %c0_i32_0 = arith.constant 0 : i32
    return %arg0, %c0_i32, %arg1 : i32, i32, i32
  }
  func.func @transform_1(%arg0: i32, %arg1: i32) -> (i32, i32, i32) {
    %c0_i32 = arith.constant 0 : i32
    %c0_i32_0 = arith.constant 0 : i32
    return %arg0, %c0_i32, %arg1 : i32, i32, i32
  }
  func.func @transform_2(%arg0: i32, %arg1: i32) -> (i32, i32, i32) {
    %c0_i32 = arith.constant 0 : i32
    %c0_i32_0 = arith.constant 0 : i32
    return %arg0, %c0_i32, %arg1 : i32, i32, i32
  }
  func.func @transform_3(%arg0: i32, %arg1: i32) -> (i32, i32) {
    %c0_i32 = arith.constant 0 : i32
    %c0_i32_0 = arith.constant 0 : i32
    %c0_i32_1 = arith.constant 0 : i32
    return %c0_i32, %c0_i32_0 : i32, i32
  }
  func.func @transform_4(%arg0: i32, %arg1: i32) -> (i32, i32) {
    %c0_i32 = arith.constant 0 : i32
    %c0_i32_0 = arith.constant 0 : i32
    %c0_i32_1 = arith.constant 0 : i32
    return %c0_i32, %c0_i32_0 : i32, i32
  }
  func.func @transform_5(%arg0: i32, %arg1: i32) -> (i32, i32) {
    %c0_i32 = arith.constant 0 : i32
    %c0_i32_0 = arith.constant 0 : i32
    %c0_i32_1 = arith.constant 0 : i32
    return %c0_i32, %c0_i32_0 : i32, i32
  }
  func.func @transform_6(%arg0: i32, %arg1: i32) -> (i32, i32) {
    %c0_i32 = arith.constant 0 : i32
    %c0_i32_0 = arith.constant 0 : i32
    %c0_i32_1 = arith.constant 0 : i32
    return %c0_i32, %c0_i32_0 : i32, i32
  }
  func.func @transform_7(%arg0: i32, %arg1: i32) -> (i32, i32, i32) {
    %c0_i32 = arith.constant 0 : i32
    %c0_i32_0 = arith.constant 0 : i32
    return %arg0, %c0_i32, %arg1 : i32, i32, i32
  }
}

module attributes {stable_mosaic.version = 11 : i64} {
  func.func @_attn_kernel(%arg0: i32, %arg1: memref<1x48x256xf32, #tpu.memory_space<vmem>>, %arg2: memref<2xf32, #tpu.memory_space<smem>>, %arg3: memref<3xf32, #tpu.memory_space<smem>>, %arg4: memref<1x16x256xf32, #tpu.memory_space<vmem>>) attributes {dimension_semantics = [#tpu.dimension_semantics<parallel>], iteration_bounds = array<i64: 2>, scalar_prefetch = 0 : i64, scratch_operands = 0 : i64, tpu.core_type = #tpu.core_type<tc>, window_params = [{transform_indices = @transform_0, window_bounds = array<i64: 1, 48, 256>}, {transform_indices = @transform_1, window_bounds = array<i64: 2>}, {transform_indices = @transform_2, window_bounds = array<i64: 3>}, {transform_indices = @transform_3, window_bounds = array<i64: 1, 16, 256>}]} {
    %0 = tpu.iota {dimensions = array<i32: 1>} : vector<8x8xi32>
    %c0 = arith.constant 0 : index
    %c0_0 = arith.constant 0 : index
    %c0_1 = arith.constant 0 : index
    %1 = vector.load %arg1[%c0, %c0_0, %c0_1] : memref<1x48x256xf32, #tpu.memory_space<vmem>>, vector<1x8x256xf32>
    %2 = vector.shape_cast %1 : vector<1x8x256xf32> to vector<8x256xf32>
    %c0_2 = arith.constant 0 : index
    %c8 = arith.constant 8 : index
    %c0_3 = arith.constant 0 : index
    %3 = vector.load %arg1[%c0_2, %c8, %c0_3] : memref<1x48x256xf32, #tpu.memory_space<vmem>>, vector<1x8x256xf32>
    %4 = vector.shape_cast %3 : vector<1x8x256xf32> to vector<8x256xf32>
    %c0_4 = arith.constant 0 : index
    %c16 = arith.constant 16 : index
    %c0_5 = arith.constant 0 : index
    %5 = vector.load %arg1[%c0_4, %c16, %c0_5] : memref<1x48x256xf32, #tpu.memory_space<vmem>>, vector<1x8x256xf32>
    %6 = vector.shape_cast %5 : vector<1x8x256xf32> to vector<8x256xf32>
    %7 = arith.mulf %2, %2 : vector<8x256xf32>
    %cst = arith.constant dense<0.000000e+00> : vector<8xf32>
    %8 = vector.multi_reduction <add>, %7, %cst [1] : vector<8x256xf32> to vector<8xf32>
    %9 = vector.shape_cast %8 : vector<8xf32> to vector<8x1xf32>
    %cst_6 = arith.constant 1.000000e-24 : f32
    %10 = vector.broadcast %cst_6 : f32 to vector<8x1xf32>
    %11 = arith.maximumf %9, %10 : vector<8x1xf32>
    %12 = math.rsqrt %11 : vector<8x1xf32>
    %13 = vector.broadcast %12 : vector<8x1xf32> to vector<8x256xf32>
    %14 = arith.mulf %2, %13 : vector<8x256xf32>
    %15 = arith.mulf %4, %4 : vector<8x256xf32>
    %cst_7 = arith.constant dense<0.000000e+00> : vector<8xf32>
    %16 = vector.multi_reduction <add>, %15, %cst_7 [1] : vector<8x256xf32> to vector<8xf32>
    %17 = vector.shape_cast %16 : vector<8xf32> to vector<8x1xf32>
    %cst_8 = arith.constant 1.000000e-24 : f32
    %18 = vector.broadcast %cst_8 : f32 to vector<8x1xf32>
    %19 = arith.maximumf %17, %18 : vector<8x1xf32>
    %20 = math.rsqrt %19 : vector<8x1xf32>
    %21 = vector.broadcast %20 : vector<8x1xf32> to vector<8x256xf32>
    %22 = arith.mulf %4, %21 : vector<8x256xf32>
    %c0_9 = arith.constant 0 : index
    %23 = memref.load %arg2[%c0_9] : memref<2xf32, #tpu.memory_space<smem>>
    %cst_10 = arith.constant dense<0.000000e+00> : vector<8x8xf32>
    %24 = tpu.matmul %14, %22, %cst_10 {dimension_numbers = #tpu.dot_dimension_numbers<[1], [1], [0], [0], [0, 0, 1, 0], [], []>} : vector<8x256xf32>, vector<8x256xf32>, vector<8x8xf32> -> vector<8x8xf32>
    %25 = vector.broadcast %23 : f32 to vector<8x8xf32>
    %26 = arith.mulf %24, %25 : vector<8x8xf32>
    %cst_11 = arith.constant 0.000000e+00 : f32
    %27 = vector.broadcast %cst_11 : f32 to vector<8x8xf32>
    %c0_i32 = arith.constant 0 : i32
    %28 = vector.broadcast %c0_i32 : i32 to vector<8x8xi32>
    %29 = arith.cmpi eq, %0, %28 : vector<8x8xi32>
    %cst_12 = arith.constant 0.000000e+00 : f32
    %30 = vector.broadcast %cst_12 : f32 to vector<8x8xf32>
    %31 = arith.select %29, %26, %30 : vector<8x8xi1>, vector<8x8xf32>
    %cst_13 = arith.constant dense<0.000000e+00> : vector<8xf32>
    %32 = vector.multi_reduction <add>, %31, %cst_13 [1] : vector<8x8xf32> to vector<8xf32>
    %33 = vector.shape_cast %32 : vector<8xf32> to vector<8x1xf32>
    %34 = vector.broadcast %33 : vector<8x1xf32> to vector<8x8xf32>
    %35 = arith.cmpf ogt, %34, %26 : vector<8x8xf32>
    %36 = arith.extui %35 : vector<8x8xi1> to vector<8x8xi32>
    %37 = arith.sitofp %36 : vector<8x8xi32> to vector<8x8xf32>
    %38 = arith.addf %27, %37 : vector<8x8xf32>
    %c1_i32 = arith.constant 1 : i32
    %39 = vector.broadcast %c1_i32 : i32 to vector<8x8xi32>
    %40 = arith.cmpi eq, %0, %39 : vector<8x8xi32>
    %cst_14 = arith.constant 0.000000e+00 : f32
    %41 = vector.broadcast %cst_14 : f32 to vector<8x8xf32>
    %42 = arith.select %40, %26, %41 : vector<8x8xi1>, vector<8x8xf32>
    %cst_15 = arith.constant dense<0.000000e+00> : vector<8xf32>
    %43 = vector.multi_reduction <add>, %42, %cst_15 [1] : vector<8x8xf32> to vector<8xf32>
    %44 = vector.shape_cast %43 : vector<8xf32> to vector<8x1xf32>
    %45 = vector.broadcast %44 : vector<8x1xf32> to vector<8x8xf32>
    %46 = arith.cmpf ogt, %45, %26 : vector<8x8xf32>
    %47 = arith.extui %46 : vector<8x8xi1> to vector<8x8xi32>
    %48 = arith.sitofp %47 : vector<8x8xi32> to vector<8x8xf32>
    %49 = arith.addf %38, %48 : vector<8x8xf32>
    %c2_i32 = arith.constant 2 : i32
    %50 = vector.broadcast %c2_i32 : i32 to vector<8x8xi32>
    %51 = arith.cmpi eq, %0, %50 : vector<8x8xi32>
    %cst_16 = arith.constant 0.000000e+00 : f32
    %52 = vector.broadcast %cst_16 : f32 to vector<8x8xf32>
    %53 = arith.select %51, %26, %52 : vector<8x8xi1>, vector<8x8xf32>
    %cst_17 = arith.constant dense<0.000000e+00> : vector<8xf32>
    %54 = vector.multi_reduction <add>, %53, %cst_17 [1] : vector<8x8xf32> to vector<8xf32>
    %55 = vector.shape_cast %54 : vector<8xf32> to vector<8x1xf32>
    %56 = vector.broadcast %55 : vector<8x1xf32> to vector<8x8xf32>
    %57 = arith.cmpf ogt, %56, %26 : vector<8x8xf32>
    %58 = arith.extui %57 : vector<8x8xi1> to vector<8x8xi32>
    %59 = arith.sitofp %58 : vector<8x8xi32> to vector<8x8xf32>
    %60 = arith.addf %49, %59 : vector<8x8xf32>
    %c3_i32 = arith.constant 3 : i32
    %61 = vector.broadcast %c3_i32 : i32 to vector<8x8xi32>
    %62 = arith.cmpi eq, %0, %61 : vector<8x8xi32>
    %cst_18 = arith.constant 0.000000e+00 : f32
    %63 = vector.broadcast %cst_18 : f32 to vector<8x8xf32>
    %64 = arith.select %62, %26, %63 : vector<8x8xi1>, vector<8x8xf32>
    %cst_19 = arith.constant dense<0.000000e+00> : vector<8xf32>
    %65 = vector.multi_reduction <add>, %64, %cst_19 [1] : vector<8x8xf32> to vector<8xf32>
    %66 = vector.shape_cast %65 : vector<8xf32> to vector<8x1xf32>
    %67 = vector.broadcast %66 : vector<8x1xf32> to vector<8x8xf32>
    %68 = arith.cmpf ogt, %67, %26 : vector<8x8xf32>
    %69 = arith.extui %68 : vector<8x8xi1> to vector<8x8xi32>
    %70 = arith.sitofp %69 : vector<8x8xi32> to vector<8x8xf32>
    %71 = arith.addf %60, %70 : vector<8x8xf32>
    %c4_i32 = arith.constant 4 : i32
    %72 = vector.broadcast %c4_i32 : i32 to vector<8x8xi32>
    %73 = arith.cmpi eq, %0, %72 : vector<8x8xi32>
    %cst_20 = arith.constant 0.000000e+00 : f32
    %74 = vector.broadcast %cst_20 : f32 to vector<8x8xf32>
    %75 = arith.select %73, %26, %74 : vector<8x8xi1>, vector<8x8xf32>
    %cst_21 = arith.constant dense<0.000000e+00> : vector<8xf32>
    %76 = vector.multi_reduction <add>, %75, %cst_21 [1] : vector<8x8xf32> to vector<8xf32>
    %77 = vector.shape_cast %76 : vector<8xf32> to vector<8x1xf32>
    %78 = vector.broadcast %77 : vector<8x1xf32> to vector<8x8xf32>
    %79 = arith.cmpf ogt, %78, %26 : vector<8x8xf32>
    %80 = arith.extui %79 : vector<8x8xi1> to vector<8x8xi32>
    %81 = arith.sitofp %80 : vector<8x8xi32> to vector<8x8xf32>
    %82 = arith.addf %71, %81 : vector<8x8xf32>
    %c5_i32 = arith.constant 5 : i32
    %83 = vector.broadcast %c5_i32 : i32 to vector<8x8xi32>
    %84 = arith.cmpi eq, %0, %83 : vector<8x8xi32>
    %cst_22 = arith.constant 0.000000e+00 : f32
    %85 = vector.broadcast %cst_22 : f32 to vector<8x8xf32>
    %86 = arith.select %84, %26, %85 : vector<8x8xi1>, vector<8x8xf32>
    %cst_23 = arith.constant dense<0.000000e+00> : vector<8xf32>
    %87 = vector.multi_reduction <add>, %86, %cst_23 [1] : vector<8x8xf32> to vector<8xf32>
    %88 = vector.shape_cast %87 : vector<8xf32> to vector<8x1xf32>
    %89 = vector.broadcast %88 : vector<8x1xf32> to vector<8x8xf32>
    %90 = arith.cmpf ogt, %89, %26 : vector<8x8xf32>
    %91 = arith.extui %90 : vector<8x8xi1> to vector<8x8xi32>
    %92 = arith.sitofp %91 : vector<8x8xi32> to vector<8x8xf32>
    %93 = arith.addf %82, %92 : vector<8x8xf32>
    %c6_i32 = arith.constant 6 : i32
    %94 = vector.broadcast %c6_i32 : i32 to vector<8x8xi32>
    %95 = arith.cmpi eq, %0, %94 : vector<8x8xi32>
    %cst_24 = arith.constant 0.000000e+00 : f32
    %96 = vector.broadcast %cst_24 : f32 to vector<8x8xf32>
    %97 = arith.select %95, %26, %96 : vector<8x8xi1>, vector<8x8xf32>
    %cst_25 = arith.constant dense<0.000000e+00> : vector<8xf32>
    %98 = vector.multi_reduction <add>, %97, %cst_25 [1] : vector<8x8xf32> to vector<8xf32>
    %99 = vector.shape_cast %98 : vector<8xf32> to vector<8x1xf32>
    %100 = vector.broadcast %99 : vector<8x1xf32> to vector<8x8xf32>
    %101 = arith.cmpf ogt, %100, %26 : vector<8x8xf32>
    %102 = arith.extui %101 : vector<8x8xi1> to vector<8x8xi32>
    %103 = arith.sitofp %102 : vector<8x8xi32> to vector<8x8xf32>
    %104 = arith.addf %93, %103 : vector<8x8xf32>
    %c7_i32 = arith.constant 7 : i32
    %105 = vector.broadcast %c7_i32 : i32 to vector<8x8xi32>
    %106 = arith.cmpi eq, %0, %105 : vector<8x8xi32>
    %cst_26 = arith.constant 0.000000e+00 : f32
    %107 = vector.broadcast %cst_26 : f32 to vector<8x8xf32>
    %108 = arith.select %106, %26, %107 : vector<8x8xi1>, vector<8x8xf32>
    %cst_27 = arith.constant dense<0.000000e+00> : vector<8xf32>
    %109 = vector.multi_reduction <add>, %108, %cst_27 [1] : vector<8x8xf32> to vector<8xf32>
    %110 = vector.shape_cast %109 : vector<8xf32> to vector<8x1xf32>
    %111 = vector.broadcast %110 : vector<8x1xf32> to vector<8x8xf32>
    %112 = arith.cmpf ogt, %111, %26 : vector<8x8xf32>
    %113 = arith.extui %112 : vector<8x8xi1> to vector<8x8xi32>
    %114 = arith.sitofp %113 : vector<8x8xi32> to vector<8x8xf32>
    %115 = arith.addf %104, %114 : vector<8x8xf32>
    %c8_i32 = arith.constant 8 : i32
    %cst_28 = arith.constant dense<0xFF800000> : vector<8xf32>
    %116 = vector.multi_reduction <maximumf>, %26, %cst_28 [1] : vector<8x8xf32> to vector<8xf32>
    %117 = vector.shape_cast %116 : vector<8xf32> to vector<8x1xf32>
    %118 = vector.broadcast %117 : vector<8x1xf32> to vector<8x8xf32>
    %119 = arith.subf %26, %118 : vector<8x8xf32>
    %120 = math.exp %119 : vector<8x8xf32>
    %cst_29 = arith.constant 0.000000e+00 : f32
    %121 = vector.broadcast %cst_29 : f32 to vector<8x8xf32>
    %cst_30 = arith.constant 4.000000e+00 : f32
    %122 = vector.broadcast %cst_30 : f32 to vector<8x8xf32>
    %123 = arith.cmpf olt, %115, %122 : vector<8x8xf32>
    %cst_31 = arith.constant 0.000000e+00 : f32
    %124 = vector.broadcast %cst_31 : f32 to vector<8x8xf32>
    %125 = arith.select %123, %120, %124 : vector<8x8xi1>, vector<8x8xf32>
    %cst_32 = arith.constant dense<0.000000e+00> : vector<8xf32>
    %126 = vector.multi_reduction <add>, %125, %cst_32 [1] : vector<8x8xf32> to vector<8xf32>
    %127 = vector.shape_cast %126 : vector<8xf32> to vector<8x1xf32>
    %128 = tpu.reciprocal %127 {approx = true} : vector<8x1xf32> -> vector<8x1xf32>
    %c0_33 = arith.constant 0 : index
    %129 = memref.load %arg3[%c0_33] : memref<3xf32, #tpu.memory_space<smem>>
    %130 = vector.broadcast %128 : vector<8x1xf32> to vector<8x8xf32>
    %131 = arith.mulf %125, %130 : vector<8x8xf32>
    %132 = vector.broadcast %129 : f32 to vector<8x8xf32>
    %133 = arith.mulf %132, %131 : vector<8x8xf32>
    %134 = arith.addf %121, %133 : vector<8x8xf32>
    %cst_34 = arith.constant 5.000000e+00 : f32
    %135 = vector.broadcast %cst_34 : f32 to vector<8x8xf32>
    %136 = arith.cmpf olt, %115, %135 : vector<8x8xf32>
    %cst_35 = arith.constant 0.000000e+00 : f32
    %137 = vector.broadcast %cst_35 : f32 to vector<8x8xf32>
    %138 = arith.select %136, %120, %137 : vector<8x8xi1>, vector<8x8xf32>
    %cst_36 = arith.constant dense<0.000000e+00> : vector<8xf32>
    %139 = vector.multi_reduction <add>, %138, %cst_36 [1] : vector<8x8xf32> to vector<8xf32>
    %140 = vector.shape_cast %139 : vector<8xf32> to vector<8x1xf32>
    %141 = tpu.reciprocal %140 {approx = true} : vector<8x1xf32> -> vector<8x1xf32>
    %c1 = arith.constant 1 : index
    %142 = memref.load %arg3[%c1] : memref<3xf32, #tpu.memory_space<smem>>
    %143 = vector.broadcast %141 : vector<8x1xf32> to vector<8x8xf32>
    %144 = arith.mulf %138, %143 : vector<8x8xf32>
    %145 = vector.broadcast %142 : f32 to vector<8x8xf32>
    %146 = arith.mulf %145, %144 : vector<8x8xf32>
    %147 = arith.addf %134, %146 : vector<8x8xf32>
    %cst_37 = arith.constant 6.000000e+00 : f32
    %148 = vector.broadcast %cst_37 : f32 to vector<8x8xf32>
    %149 = arith.cmpf olt, %115, %148 : vector<8x8xf32>
    %cst_38 = arith.constant 0.000000e+00 : f32
    %150 = vector.broadcast %cst_38 : f32 to vector<8x8xf32>
    %151 = arith.select %149, %120, %150 : vector<8x8xi1>, vector<8x8xf32>
    %cst_39 = arith.constant dense<0.000000e+00> : vector<8xf32>
    %152 = vector.multi_reduction <add>, %151, %cst_39 [1] : vector<8x8xf32> to vector<8xf32>
    %153 = vector.shape_cast %152 : vector<8xf32> to vector<8x1xf32>
    %154 = tpu.reciprocal %153 {approx = true} : vector<8x1xf32> -> vector<8x1xf32>
    %c2 = arith.constant 2 : index
    %155 = memref.load %arg3[%c2] : memref<3xf32, #tpu.memory_space<smem>>
    %156 = vector.broadcast %154 : vector<8x1xf32> to vector<8x8xf32>
    %157 = arith.mulf %151, %156 : vector<8x8xf32>
    %158 = vector.broadcast %155 : f32 to vector<8x8xf32>
    %159 = arith.mulf %158, %157 : vector<8x8xf32>
    %160 = arith.addf %147, %159 : vector<8x8xf32>
    %cst_40 = arith.constant dense<0.000000e+00> : vector<8x256xf32>
    %161 = tpu.matmul %160, %6, %cst_40 {dimension_numbers = #tpu.dot_dimension_numbers<[1], [0], [0], [1], [0, 0, 1, 1], [], []>} : vector<8x8xf32>, vector<8x256xf32>, vector<8x256xf32> -> vector<8x256xf32>
    %c0_41 = arith.constant 0 : index
    %c0_42 = arith.constant 0 : index
    %c0_43 = arith.constant 0 : index
    %162 = vector.load %arg4[%c0_41, %c0_42, %c0_43] : memref<1x16x256xf32, #tpu.memory_space<vmem>>, vector<1x8x256xf32>
    %163 = vector.shape_cast %162 : vector<1x8x256xf32> to vector<8x256xf32>
    %164 = vector.shape_cast %161 : vector<8x256xf32> to vector<1x8x256xf32>
    tpu.vector_store %arg4[%c0_41, %c0_42, %c0_43], %164 {strides = array<i32>} : memref<1x16x256xf32, #tpu.memory_space<vmem>>, vector<1x8x256xf32>,
    %c0_44 = arith.constant 0 : index
    %c24 = arith.constant 24 : index
    %c0_45 = arith.constant 0 : index
    %165 = vector.load %arg1[%c0_44, %c24, %c0_45] : memref<1x48x256xf32, #tpu.memory_space<vmem>>, vector<1x8x256xf32>
    %166 = vector.shape_cast %165 : vector<1x8x256xf32> to vector<8x256xf32>
    %c0_46 = arith.constant 0 : index
    %c32 = arith.constant 32 : index
    %c0_47 = arith.constant 0 : index
    %167 = vector.load %arg1[%c0_46, %c32, %c0_47] : memref<1x48x256xf32, #tpu.memory_space<vmem>>, vector<1x8x256xf32>
    %168 = vector.shape_cast %167 : vector<1x8x256xf32> to vector<8x256xf32>
    %c0_48 = arith.constant 0 : index
    %c40 = arith.constant 40 : index
    %c0_49 = arith.constant 0 : index
    %169 = vector.load %arg1[%c0_48, %c40, %c0_49] : memref<1x48x256xf32, #tpu.memory_space<vmem>>, vector<1x8x256xf32>
    %170 = vector.shape_cast %169 : vector<1x8x256xf32> to vector<8x256xf32>
    %171 = arith.mulf %166, %166 : vector<8x256xf32>
    %cst_50 = arith.constant dense<0.000000e+00> : vector<8xf32>
    %172 = vector.multi_reduction <add>, %171, %cst_50 [1] : vector<8x256xf32> to vector<8xf32>
    %173 = vector.shape_cast %172 : vector<8xf32> to vector<8x1xf32>
    %cst_51 = arith.constant 1.000000e-24 : f32
    %174 = vector.broadcast %cst_51 : f32 to vector<8x1xf32>
    %175 = arith.maximumf %173, %174 : vector<8x1xf32>
    %176 = math.rsqrt %175 : vector<8x1xf32>
    %177 = vector.broadcast %176 : vector<8x1xf32> to vector<8x256xf32>
    %178 = arith.mulf %166, %177 : vector<8x256xf32>
    %179 = arith.mulf %168, %168 : vector<8x256xf32>
    %cst_52 = arith.constant dense<0.000000e+00> : vector<8xf32>
    %180 = vector.multi_reduction <add>, %179, %cst_52 [1] : vector<8x256xf32> to vector<8xf32>
    %181 = vector.shape_cast %180 : vector<8xf32> to vector<8x1xf32>
    %cst_53 = arith.constant 1.000000e-24 : f32
    %182 = vector.broadcast %cst_53 : f32 to vector<8x1xf32>
    %183 = arith.maximumf %181, %182 : vector<8x1xf32>
    %184 = math.rsqrt %183 : vector<8x1xf32>
    %185 = vector.broadcast %184 : vector<8x1xf32> to vector<8x256xf32>
    %186 = arith.mulf %168, %185 : vector<8x256xf32>
    %c1_54 = arith.constant 1 : index
    %187 = memref.load %arg2[%c1_54] : memref<2xf32, #tpu.memory_space<smem>>
    %cst_55 = arith.constant dense<0.000000e+00> : vector<8x8xf32>
    %188 = tpu.matmul %178, %186, %cst_55 {dimension_numbers = #tpu.dot_dimension_numbers<[1], [1], [0], [0], [0, 0, 1, 0], [], []>} : vector<8x256xf32>, vector<8x256xf32>, vector<8x8xf32> -> vector<8x8xf32>
    %189 = vector.broadcast %187 : f32 to vector<8x8xf32>
    %190 = arith.mulf %188, %189 : vector<8x8xf32>
    %cst_56 = arith.constant 0.000000e+00 : f32
    %191 = vector.broadcast %cst_56 : f32 to vector<8x8xf32>
    %c0_i32_57 = arith.constant 0 : i32
    %192 = vector.broadcast %c0_i32_57 : i32 to vector<8x8xi32>
    %193 = arith.cmpi eq, %0, %192 : vector<8x8xi32>
    %cst_58 = arith.constant 0.000000e+00 : f32
    %194 = vector.broadcast %cst_58 : f32 to vector<8x8xf32>
    %195 = arith.select %193, %190, %194 : vector<8x8xi1>, vector<8x8xf32>
    %cst_59 = arith.constant dense<0.000000e+00> : vector<8xf32>
    %196 = vector.multi_reduction <add>, %195, %cst_59 [1] : vector<8x8xf32> to vector<8xf32>
    %197 = vector.shape_cast %196 : vector<8xf32> to vector<8x1xf32>
    %198 = vector.broadcast %197 : vector<8x1xf32> to vector<8x8xf32>
    %199 = arith.cmpf ogt, %198, %190 : vector<8x8xf32>
    %200 = arith.extui %199 : vector<8x8xi1> to vector<8x8xi32>
    %201 = arith.sitofp %200 : vector<8x8xi32> to vector<8x8xf32>
    %202 = arith.addf %191, %201 : vector<8x8xf32>
    %c1_i32_60 = arith.constant 1 : i32
    %203 = vector.broadcast %c1_i32_60 : i32 to vector<8x8xi32>
    %204 = arith.cmpi eq, %0, %203 : vector<8x8xi32>
    %cst_61 = arith.constant 0.000000e+00 : f32
    %205 = vector.broadcast %cst_61 : f32 to vector<8x8xf32>
    %206 = arith.select %204, %190, %205 : vector<8x8xi1>, vector<8x8xf32>
    %cst_62 = arith.constant dense<0.000000e+00> : vector<8xf32>
    %207 = vector.multi_reduction <add>, %206, %cst_62 [1] : vector<8x8xf32> to vector<8xf32>
    %208 = vector.shape_cast %207 : vector<8xf32> to vector<8x1xf32>
    %209 = vector.broadcast %208 : vector<8x1xf32> to vector<8x8xf32>
    %210 = arith.cmpf ogt, %209, %190 : vector<8x8xf32>
    %211 = arith.extui %210 : vector<8x8xi1> to vector<8x8xi32>
    %212 = arith.sitofp %211 : vector<8x8xi32> to vector<8x8xf32>
    %213 = arith.addf %202, %212 : vector<8x8xf32>
    %c2_i32_63 = arith.constant 2 : i32
    %214 = vector.broadcast %c2_i32_63 : i32 to vector<8x8xi32>
    %215 = arith.cmpi eq, %0, %214 : vector<8x8xi32>
    %cst_64 = arith.constant 0.000000e+00 : f32
    %216 = vector.broadcast %cst_64 : f32 to vector<8x8xf32>
    %217 = arith.select %215, %190, %216 : vector<8x8xi1>, vector<8x8xf32>
    %cst_65 = arith.constant dense<0.000000e+00> : vector<8xf32>
    %218 = vector.multi_reduction <add>, %217, %cst_65 [1] : vector<8x8xf32> to vector<8xf32>
    %219 = vector.shape_cast %218 : vector<8xf32> to vector<8x1xf32>
    %220 = vector.broadcast %219 : vector<8x1xf32> to vector<8x8xf32>
    %221 = arith.cmpf ogt, %220, %190 : vector<8x8xf32>
    %222 = arith.extui %221 : vector<8x8xi1> to vector<8x8xi32>
    %223 = arith.sitofp %222 : vector<8x8xi32> to vector<8x8xf32>
    %224 = arith.addf %213, %223 : vector<8x8xf32>
    %c3_i32_66 = arith.constant 3 : i32
    %225 = vector.broadcast %c3_i32_66 : i32 to vector<8x8xi32>
    %226 = arith.cmpi eq, %0, %225 : vector<8x8xi32>
    %cst_67 = arith.constant 0.000000e+00 : f32
    %227 = vector.broadcast %cst_67 : f32 to vector<8x8xf32>
    %228 = arith.select %226, %190, %227 : vector<8x8xi1>, vector<8x8xf32>
    %cst_68 = arith.constant dense<0.000000e+00> : vector<8xf32>
    %229 = vector.multi_reduction <add>, %228, %cst_68 [1] : vector<8x8xf32> to vector<8xf32>
    %230 = vector.shape_cast %229 : vector<8xf32> to vector<8x1xf32>
    %231 = vector.broadcast %230 : vector<8x1xf32> to vector<8x8xf32>
    %232 = arith.cmpf ogt, %231, %190 : vector<8x8xf32>
    %233 = arith.extui %232 : vector<8x8xi1> to vector<8x8xi32>
    %234 = arith.sitofp %233 : vector<8x8xi32> to vector<8x8xf32>
    %235 = arith.addf %224, %234 : vector<8x8xf32>
    %c4_i32_69 = arith.constant 4 : i32
    %236 = vector.broadcast %c4_i32_69 : i32 to vector<8x8xi32>
    %237 = arith.cmpi eq, %0, %236 : vector<8x8xi32>
    %cst_70 = arith.constant 0.000000e+00 : f32
    %238 = vector.broadcast %cst_70 : f32 to vector<8x8xf32>
    %239 = arith.select %237, %190, %238 : vector<8x8xi1>, vector<8x8xf32>
    %cst_71 = arith.constant dense<0.000000e+00> : vector<8xf32>
    %240 = vector.multi_reduction <add>, %239, %cst_71 [1] : vector<8x8xf32> to vector<8xf32>
    %241 = vector.shape_cast %240 : vector<8xf32> to vector<8x1xf32>
    %242 = vector.broadcast %241 : vector<8x1xf32> to vector<8x8xf32>
    %243 = arith.cmpf ogt, %242, %190 : vector<8x8xf32>
    %244 = arith.extui %243 : vector<8x8xi1> to vector<8x8xi32>
    %245 = arith.sitofp %244 : vector<8x8xi32> to vector<8x8xf32>
    %246 = arith.addf %235, %245 : vector<8x8xf32>
    %c5_i32_72 = arith.constant 5 : i32
    %247 = vector.broadcast %c5_i32_72 : i32 to vector<8x8xi32>
    %248 = arith.cmpi eq, %0, %247 : vector<8x8xi32>
    %cst_73 = arith.constant 0.000000e+00 : f32
    %249 = vector.broadcast %cst_73 : f32 to vector<8x8xf32>
    %250 = arith.select %248, %190, %249 : vector<8x8xi1>, vector<8x8xf32>
    %cst_74 = arith.constant dense<0.000000e+00> : vector<8xf32>
    %251 = vector.multi_reduction <add>, %250, %cst_74 [1] : vector<8x8xf32> to vector<8xf32>
    %252 = vector.shape_cast %251 : vector<8xf32> to vector<8x1xf32>
    %253 = vector.broadcast %252 : vector<8x1xf32> to vector<8x8xf32>
    %254 = arith.cmpf ogt, %253, %190 : vector<8x8xf32>
    %255 = arith.extui %254 : vector<8x8xi1> to vector<8x8xi32>
    %256 = arith.sitofp %255 : vector<8x8xi32> to vector<8x8xf32>
    %257 = arith.addf %246, %256 : vector<8x8xf32>
    %c6_i32_75 = arith.constant 6 : i32
    %258 = vector.broadcast %c6_i32_75 : i32 to vector<8x8xi32>
    %259 = arith.cmpi eq, %0, %258 : vector<8x8xi32>
    %cst_76 = arith.constant 0.000000e+00 : f32
    %260 = vector.broadcast %cst_76 : f32 to vector<8x8xf32>
    %261 = arith.select %259, %190, %260 : vector<8x8xi1>, vector<8x8xf32>
    %cst_77 = arith.constant dense<0.000000e+00> : vector<8xf32>
    %262 = vector.multi_reduction <add>, %261, %cst_77 [1] : vector<8x8xf32> to vector<8xf32>
    %263 = vector.shape_cast %262 : vector<8xf32> to vector<8x1xf32>
    %264 = vector.broadcast %263 : vector<8x1xf32> to vector<8x8xf32>
    %265 = arith.cmpf ogt, %264, %190 : vector<8x8xf32>
    %266 = arith.extui %265 : vector<8x8xi1> to vector<8x8xi32>
    %267 = arith.sitofp %266 : vector<8x8xi32> to vector<8x8xf32>
    %268 = arith.addf %257, %267 : vector<8x8xf32>
    %c7_i32_78 = arith.constant 7 : i32
    %269 = vector.broadcast %c7_i32_78 : i32 to vector<8x8xi32>
    %270 = arith.cmpi eq, %0, %269 : vector<8x8xi32>
    %cst_79 = arith.constant 0.000000e+00 : f32
    %271 = vector.broadcast %cst_79 : f32 to vector<8x8xf32>
    %272 = arith.select %270, %190, %271 : vector<8x8xi1>, vector<8x8xf32>
    %cst_80 = arith.constant dense<0.000000e+00> : vector<8xf32>
    %273 = vector.multi_reduction <add>, %272, %cst_80 [1] : vector<8x8xf32> to vector<8xf32>
    %274 = vector.shape_cast %273 : vector<8xf32> to vector<8x1xf32>
    %275 = vector.broadcast %274 : vector<8x1xf32> to vector<8x8xf32>
    %276 = arith.cmpf ogt, %275, %190 : vector<8x8xf32>
    %277 = arith.extui %276 : vector<8x8xi1> to vector<8x8xi32>
    %278 = arith.sitofp %277 : vector<8x8xi32> to vector<8x8xf32>
    %279 = arith.addf %268, %278 : vector<8x8xf32>
    %c8_i32_81 = arith.constant 8 : i32
    %cst_82 = arith.constant dense<0xFF800000> : vector<8xf32>
    %280 = vector.multi_reduction <maximumf>, %190, %cst_82 [1] : vector<8x8xf32> to vector<8xf32>
    %281 = vector.shape_cast %280 : vector<8xf32> to vector<8x1xf32>
    %282 = vector.broadcast %281 : vector<8x1xf32> to vector<8x8xf32>
    %283 = arith.subf %190, %282 : vector<8x8xf32>
    %284 = math.exp %283 : vector<8x8xf32>
    %cst_83 = arith.constant 0.000000e+00 : f32
    %285 = vector.broadcast %cst_83 : f32 to vector<8x8xf32>
    %cst_84 = arith.constant 4.000000e+00 : f32
    %286 = vector.broadcast %cst_84 : f32 to vector<8x8xf32>
    %287 = arith.cmpf olt, %279, %286 : vector<8x8xf32>
    %cst_85 = arith.constant 0.000000e+00 : f32
    %288 = vector.broadcast %cst_85 : f32 to vector<8x8xf32>
    %289 = arith.select %287, %284, %288 : vector<8x8xi1>, vector<8x8xf32>
    %cst_86 = arith.constant dense<0.000000e+00> : vector<8xf32>
    %290 = vector.multi_reduction <add>, %289, %cst_86 [1] : vector<8x8xf32> to vector<8xf32>
    %291 = vector.shape_cast %290 : vector<8xf32> to vector<8x1xf32>
    %292 = tpu.reciprocal %291 {approx = true} : vector<8x1xf32> -> vector<8x1xf32>
    %c0_87 = arith.constant 0 : index
    %293 = memref.load %arg3[%c0_87] : memref<3xf32, #tpu.memory_space<smem>>
    %294 = vector.broadcast %292 : vector<8x1xf32> to vector<8x8xf32>
    %295 = arith.mulf %289, %294 : vector<8x8xf32>
    %296 = vector.broadcast %293 : f32 to vector<8x8xf32>
    %297 = arith.mulf %296, %295 : vector<8x8xf32>
    %298 = arith.addf %285, %297 : vector<8x8xf32>
    %cst_88 = arith.constant 5.000000e+00 : f32
    %299 = vector.broadcast %cst_88 : f32 to vector<8x8xf32>
    %300 = arith.cmpf olt, %279, %299 : vector<8x8xf32>
    %cst_89 = arith.constant 0.000000e+00 : f32
    %301 = vector.broadcast %cst_89 : f32 to vector<8x8xf32>
    %302 = arith.select %300, %284, %301 : vector<8x8xi1>, vector<8x8xf32>
    %cst_90 = arith.constant dense<0.000000e+00> : vector<8xf32>
    %303 = vector.multi_reduction <add>, %302, %cst_90 [1] : vector<8x8xf32> to vector<8xf32>
    %304 = vector.shape_cast %303 : vector<8xf32> to vector<8x1xf32>
    %305 = tpu.reciprocal %304 {approx = true} : vector<8x1xf32> -> vector<8x1xf32>
    %c1_91 = arith.constant 1 : index
    %306 = memref.load %arg3[%c1_91] : memref<3xf32, #tpu.memory_space<smem>>
    %307 = vector.broadcast %305 : vector<8x1xf32> to vector<8x8xf32>
    %308 = arith.mulf %302, %307 : vector<8x8xf32>
    %309 = vector.broadcast %306 : f32 to vector<8x8xf32>
    %310 = arith.mulf %309, %308 : vector<8x8xf32>
    %311 = arith.addf %298, %310 : vector<8x8xf32>
    %cst_92 = arith.constant 6.000000e+00 : f32
    %312 = vector.broadcast %cst_92 : f32 to vector<8x8xf32>
    %313 = arith.cmpf olt, %279, %312 : vector<8x8xf32>
    %cst_93 = arith.constant 0.000000e+00 : f32
    %314 = vector.broadcast %cst_93 : f32 to vector<8x8xf32>
    %315 = arith.select %313, %284, %314 : vector<8x8xi1>, vector<8x8xf32>
    %cst_94 = arith.constant dense<0.000000e+00> : vector<8xf32>
    %316 = vector.multi_reduction <add>, %315, %cst_94 [1] : vector<8x8xf32> to vector<8xf32>
    %317 = vector.shape_cast %316 : vector<8xf32> to vector<8x1xf32>
    %318 = tpu.reciprocal %317 {approx = true} : vector<8x1xf32> -> vector<8x1xf32>
    %c2_95 = arith.constant 2 : index
    %319 = memref.load %arg3[%c2_95] : memref<3xf32, #tpu.memory_space<smem>>
    %320 = vector.broadcast %318 : vector<8x1xf32> to vector<8x8xf32>
    %321 = arith.mulf %315, %320 : vector<8x8xf32>
    %322 = vector.broadcast %319 : f32 to vector<8x8xf32>
    %323 = arith.mulf %322, %321 : vector<8x8xf32>
    %324 = arith.addf %311, %323 : vector<8x8xf32>
    %cst_96 = arith.constant dense<0.000000e+00> : vector<8x256xf32>
    %325 = tpu.matmul %324, %170, %cst_96 {dimension_numbers = #tpu.dot_dimension_numbers<[1], [0], [0], [1], [0, 0, 1, 1], [], []>} : vector<8x8xf32>, vector<8x256xf32>, vector<8x256xf32> -> vector<8x256xf32>
    %c0_97 = arith.constant 0 : index
    %c8_98 = arith.constant 8 : index
    %c0_99 = arith.constant 0 : index
    %326 = vector.load %arg4[%c0_97, %c8_98, %c0_99] : memref<1x16x256xf32, #tpu.memory_space<vmem>>, vector<1x8x256xf32>
    %327 = vector.shape_cast %326 : vector<1x8x256xf32> to vector<8x256xf32>
    %328 = vector.shape_cast %325 : vector<8x256xf32> to vector<1x8x256xf32>
    tpu.vector_store %arg4[%c0_97, %c8_98, %c0_99], %328 {strides = array<i32>} : memref<1x16x256xf32, #tpu.memory_space<vmem>>, vector<1x8x256xf32>,
    return
  }
  func.func @transform_0(%arg0: i32) -> (i32, i32, i32) {
    %c0_i32 = arith.constant 0 : i32
    %c0_i32_0 = arith.constant 0 : i32
    %c0_i32_1 = arith.constant 0 : i32
    return %arg0, %c0_i32, %c0_i32_0 : i32, i32, i32
  }
  func.func @transform_1(%arg0: i32) -> i32 {
    %c0_i32 = arith.constant 0 : i32
    %c0_i32_0 = arith.constant 0 : i32
    return %c0_i32 : i32
  }
  func.func @transform_2(%arg0: i32) -> i32 {
    %c0_i32 = arith.constant 0 : i32
    %c0_i32_0 = arith.constant 0 : i32
    return %c0_i32 : i32
  }
  func.func @transform_3(%arg0: i32) -> (i32, i32, i32) {
    %c0_i32 = arith.constant 0 : i32
    %c0_i32_0 = arith.constant 0 : i32
    %c0_i32_1 = arith.constant 0 : i32
    return %arg0, %c0_i32, %c0_i32_0 : i32, i32, i32
  }
}

module attributes {stable_mosaic.version = 11 : i64} {
  func.func @_pconv_kernel(%arg0: i32, %arg1: i32, %arg2: memref<1x16x256xf32, #tpu.memory_space<vmem>>, %arg3: memref<16x16xf32, #tpu.memory_space<vmem>>, %arg4: memref<16x1xf32, #tpu.memory_space<vmem>>, %arg5: memref<1x16x256xf32, #tpu.memory_space<vmem>>) attributes {dimension_semantics = [#tpu.dimension_semantics<parallel>, #tpu.dimension_semantics<parallel>], iteration_bounds = array<i64: 2, 1>, scalar_prefetch = 0 : i64, scratch_operands = 0 : i64, tpu.core_type = #tpu.core_type<tc>, window_params = [{transform_indices = @transform_0, window_bounds = array<i64: 1, 16, 256>}, {pipeline_mode = #tpu.pipeline_mode<synchronous>, transform_indices = @transform_1, window_bounds = array<i64: 16, 16>}, {pipeline_mode = #tpu.pipeline_mode<synchronous>, transform_indices = @transform_2, window_bounds = array<i64: 16, 1>}, {transform_indices = @transform_3, window_bounds = array<i64: 1, 16, 256>}]} {
    %c0 = arith.constant 0 : index
    %c0_0 = arith.constant 0 : index
    %c0_1 = arith.constant 0 : index
    %0 = vector.load %arg2[%c0, %c0_0, %c0_1] : memref<1x16x256xf32, #tpu.memory_space<vmem>>, vector<1x16x256xf32>
    %1 = vector.shape_cast %0 : vector<1x16x256xf32> to vector<16x256xf32>
    %c0_2 = arith.constant 0 : index
    %c0_3 = arith.constant 0 : index
    %2 = vector.load %arg3[%c0_2, %c0_3] : memref<16x16xf32, #tpu.memory_space<vmem>>, vector<16x16xf32>
    %c0_4 = arith.constant 0 : index
    %c0_5 = arith.constant 0 : index
    %3 = vector.load %arg4[%c0_4, %c0_5] : memref<16x1xf32, #tpu.memory_space<vmem>>, vector<16x1xf32>
    %cst = arith.constant dense<0.000000e+00> : vector<16x256xf32>
    %4 = tpu.matmul %2, %1, %cst {dimension_numbers = #tpu.dot_dimension_numbers<[1], [0], [0], [1], [0, 0, 1, 1], [], []>} : vector<16x16xf32>, vector<16x256xf32>, vector<16x256xf32> -> vector<16x256xf32>
    %5 = vector.broadcast %3 : vector<16x1xf32> to vector<16x256xf32>
    %6 = arith.addf %4, %5 : vector<16x256xf32>
    %c0_6 = arith.constant 0 : index
    %c0_7 = arith.constant 0 : index
    %c0_8 = arith.constant 0 : index
    %7 = vector.load %arg5[%c0_6, %c0_7, %c0_8] : memref<1x16x256xf32, #tpu.memory_space<vmem>>, vector<1x16x256xf32>
    %8 = vector.shape_cast %7 : vector<1x16x256xf32> to vector<16x256xf32>
    %9 = vector.shape_cast %6 : vector<16x256xf32> to vector<1x16x256xf32>
    tpu.vector_store %arg5[%c0_6, %c0_7, %c0_8], %9 {strides = array<i32>} : memref<1x16x256xf32, #tpu.memory_space<vmem>>, vector<1x16x256xf32>,
    return
  }
  func.func @transform_0(%arg0: i32, %arg1: i32) -> (i32, i32, i32) {
    %c0_i32 = arith.constant 0 : i32
    %c0_i32_0 = arith.constant 0 : i32
    return %arg0, %c0_i32, %arg1 : i32, i32, i32
  }
  func.func @transform_1(%arg0: i32, %arg1: i32) -> (i32, i32) {
    %c0_i32 = arith.constant 0 : i32
    %c0_i32_0 = arith.constant 0 : i32
    %c0_i32_1 = arith.constant 0 : i32
    return %c0_i32, %c0_i32_0 : i32, i32
  }
  func.func @transform_2(%arg0: i32, %arg1: i32) -> (i32, i32) {
    %c0_i32 = arith.constant 0 : i32
    %c0_i32_0 = arith.constant 0 : i32
    %c0_i32_1 = arith.constant 0 : i32
    return %c0_i32, %c0_i32_0 : i32, i32
  }
  func.func @transform_3(%arg0: i32, %arg1: i32) -> (i32, i32, i32) {
    %c0_i32 = arith.constant 0 : i32
    %c0_i32_0 = arith.constant 0 : i32
    return %arg0, %c0_i32, %arg1 : i32, i32, i32
  }
}

</mosaic_0001>

<bundles_post_ra>
// kernel: attention_forward.4
= control target key start
LH: loop header
LB: loop body
LE: loop exit
PB: predicated region body
PF: predicated region fallthrough
CT: control target
= control target key end

     0   :  { %s545_s12 = smov 0   ;;  %s547_s13 = smov 0   ;;  %s644_s0 = inlined_call_operand.vmem [shape: f32[2,16,256], index: 0, kind: input, shape index: {}]   ;;  %s645_s1 = inlined_call_operand.vmem [shape: f32[48,16], index: 1, kind: input, shape index: {}]   ;;  %s646_s2 = inlined_call_operand.vmem [shape: f32[48,1], index: 2, kind: input, shape index: {}]   ;;  %s647_s3 = inlined_call_operand.vmem [shape: f32[2,48,256], index: 3, kind: output, shape index: {}]  }
   0x1   :  { %s549_s14 = smov 0  }
   0x2 LB: > { %s25_s15 = sadd.s32 1, %s518_s13  ;;  %p448_p0 = scmp.ge.s32.totalorder %s522_s14, 1  ;;  %s522_s14 = sphi %s549_s14, %s13_s14   ;;  %s518_s13 = sphi %s547_s13, %s649_s13   ;;  %s514_s12 = sphi %s545_s12, %s648_s12  }
   0x3   : > { %p27_p1 = scmp.ge.s32.totalorder %s25_s15, 2  ;;  %p158_p2 = scmp.lt.s32.totalorder %s522_s14, 3 }
   0x5   : > { %s651_s15 = smov (%p27_p1, %s25_s15), 0  ;;  %p159_p3 = pnand %p448_p0, %p158_p2 }
   0x6   : > { %p191_p4 = scmp.lt.s32.totalorder (!%p159_p3), %s514_s12, 1 }
   0x7   : > { %162 = sbr.rel (%p159_p3) target bundleno = 172 (0xac), region = 32 }
   0xc   : > { %v524_v0 = vmov 0   ;;  %v222_v1 = vld [vmem:[%s646_s2 + $0x10] sm:$0xff]  ;;  %s653_s12 = smov (!%p191_p4, %s514_s12), 1  ;;  %v220_v2 = vld [vmem:[%s646_s2] sm:$0xff]  ;;  %vm256_vm0 = vcmask 130048   ;;  %v217_v9 = vld [vmem:[%s645_s1 + $0x18] sm:$0xff] }
   0xd   : > { %498 = vset.pattern.permute.xlu1 %v524_v0  ;;  %497 = vset.pattern.permute.xlu0 %v524_v0  ;;  %v224_v3 = vld [vmem:[%s646_s2 + $0x20] sm:$0xff]  ;;  %s466_s22 = sshll.u32 %s653_s12, 5  ;;  %v223_v10 = vld [vmem:[%s646_s2 + $0x18] sm:$0xff]  ;;  %v221_v11 = vld [vmem:[%s646_s2 + $0x8] sm:$0xff]  ;;  %s471_s21 = smul.u32 96, %s653_s12 }
   0xe   : > { %238 = vperm.xlu1 %498, %v222_v1   ;;  %499 = vset.pattern.permute.xlu2 %v524_v0  ;;  %s198_s25 = scalar_lea.vmem %s644_s0, %s466_s22  ;;  %v214_v8 = vld [vmem:[%s645_s1] sm:$0xff]  ;;  %v225_v12 = vld [vmem:[%s646_s2 + $0x28] sm:$0xff]  ;;  %v216_v15 = vld [vmem:[%s645_s1 + $0x10] sm:$0xff] }
   0xf   : > { %228 = vperm.xlu0 %497, %v220_v2   ;;  %248 = vperm.xlu2 %499, %v224_v3   ;;  %v212_v4 = vld [vmem:[%s198_s25 + $0x10] sm:$0xff]  ;;  %v213_v5 = vld [vmem:[%s198_s25 + $0x18] sm:$0xff]  ;;  %v210_v6 = vld [vmem:[%s198_s25] sm:$0xff]  ;;  %s621_s24 = scalar_lea.vmem %s647_s3, %s471_s21 }
  0x10   : > { %289 = vmatpush.msra.mxu0 %v212_v4  ;;  %467 = vmatpush.msra.mxu2 %v212_v4  ;;  %v211_v7 = vld [vmem:[%s198_s25 + $0x8] sm:$0xff]  ;;  %v218_v14 = vld [vmem:[%s645_s1 + $0x20] sm:$0xff] }
  0x11   : > { %324 = vmatpush.msra.mxu1 %v213_v5  ;;  %469 = vmatpush.msra.mxu3 %v213_v5  ;;  %v215_v13 = vld [vmem:[%s645_s1 + $0x8] sm:$0xff] }
  0x12   : > { %290 = vmatpush.msra.mxu0 %v210_v6  ;;  %468 = vmatpush.msra.mxu2 %v210_v6  ;;  %v219_v16 = vld [vmem:[%s645_s1 + $0x28] sm:$0xff] }
  0x13   : > { %325 = vmatpush.msra.mxu1 %v211_v7  ;;  %470 = vmatpush.msra.mxu3 %v211_v7 }
  0x14   : > { %452 = vmatmul.msk.f32.vlgmr.msra.gmra.mxu0 %vm256_vm0, %v214_v8  ;;  %455 = vmatmul.msk.f32.vlgmr.msra.gmra.mxu2 %vm256_vm0, %v217_v9 }
  0x15   : > { %458 = vmatmul.msk.f32.vlgmr.msra.gmra.mxu1 %vm256_vm0, %v214_v8  ;;  %461 = vmatmul.msk.f32.vlgmr.msra.gmra.mxu3 %vm256_vm0, %v217_v9 }
  0x16   : > { %243 = vperm.xlu1 %498, %v223_v10  }
  0x17   : > { %233 = vperm.xlu0 %497, %v221_v11   ;;  %253 = vperm.xlu2 %499, %v225_v12  }
  0x1c   : > { %453 = vmatmul.msk.f32.gmra.mxu0 %vm256_vm0, %v215_v13  ;;  %456 = vmatmul.msk.f32.gmra.mxu2 %vm256_vm0, %v218_v14 }
  0x1d   : > { %459 = vmatmul.msk.f32.gmra.mxu1 %vm256_vm0, %v215_v13  ;;  %462 = vmatmul.msk.f32.gmra.mxu3 %vm256_vm0, %v218_v14 }
  0x24   : > { %454 = vmatmul.msk.f32.gmra.mxu0 %vm256_vm0, %v216_v15  ;;  %457 = vmatmul.msk.f32.gmra.mxu2 %vm256_vm0, %v219_v16 }
  0x25   : > { %460 = vmatmul.msk.f32.gmra.mxu1 %vm256_vm0, %v216_v15  ;;  %463 = vmatmul.msk.f32.gmra.mxu3 %vm256_vm0, %v219_v16 }
  0x69   : > { %v249_v33 = vpop.permute.xlu2 %248 }
  0x71   : > { %v254_v42 = vpop.permute.xlu2 %253 }
  0x80   : > { %v239_v17 = vpop.permute.xlu1 %238 }
  0x81   : > { %v229_v18 = vpop.permute.xlu0 %228 }
  0x88   : > { %v244_v23 = vpop.permute.xlu1 %243 }
  0x89   : > { %v234_v25 = vpop.permute.xlu0 %233 }
  0x91   : > { %v292_v19 = vpop.f32.mrf.mxu0 }
  0x92   : > { %v327_v20 = vpop.f32.mrf.mxu1  ;;  %v293_v21 = vadd.f32 %v292_v19, %v229_v18 }
  0x93   : > { %v328_v22 = vadd.f32 %v327_v20, %v229_v18 }
  0x94   : > { %345 = vst [vmem:[%s621_s24] sm:$0xff] %v293_v21 }
  0x95   : > { %346 = vst [vmem:[%s621_s24 + $0x8] sm:$0xff] %v328_v22 }
  0x97   : > { %v301_v24 = vpop.f32.mrf.mxu2 }
  0x98   : > { %v302_v26 = vadd.f32 %v301_v24, %v244_v23  ;;  %v336_v27 = vpop.f32.mrf.mxu3 }
  0x99   : > { %v337_v28 = vadd.f32 %v336_v27, %v244_v23  ;;  %v295_v29 = vpop.f32.mrf.mxu0 }
  0x9a   : > { %351 = vst [vmem:[%s621_s24 + $0x30] sm:$0xff] %v302_v26  ;;  %v330_v30 = vpop.f32.mrf.mxu1  ;;  %v296_v31 = vadd.f32 %v295_v29, %v234_v25 }
  0x9b   : > { %352 = vst [vmem:[%s621_s24 + $0x38] sm:$0xff] %v337_v28  ;;  %v331_v32 = vadd.f32 %v330_v30, %v234_v25 }
  0x9c   : > { %347 = vst [vmem:[%s621_s24 + $0x10] sm:$0xff] %v296_v31 }
  0x9d   : > { %348 = vst [vmem:[%s621_s24 + $0x18] sm:$0xff] %v331_v32 }
  0x9f   : > { %v304_v34 = vpop.f32.mrf.mxu2 }
  0xa0   : > { %v305_v35 = vadd.f32 %v304_v34, %v249_v33  ;;  %v339_v36 = vpop.f32.mrf.mxu3 }
  0xa1   : > { %v340_v37 = vadd.f32 %v339_v36, %v249_v33  ;;  %v298_v38 = vpop.f32.mrf.mxu0 }
  0xa2   : > { %353 = vst [vmem:[%s621_s24 + $0x40] sm:$0xff] %v305_v35  ;;  %v299_v39 = vadd.f32 %v298_v38, %v239_v17  ;;  %v333_v40 = vpop.f32.mrf.mxu1 }
  0xa3   : > { %354 = vst [vmem:[%s621_s24 + $0x48] sm:$0xff] %v340_v37  ;;  %v334_v41 = vadd.f32 %v333_v40, %v239_v17 }
  0xa4   : > { %349 = vst [vmem:[%s621_s24 + $0x20] sm:$0xff] %v299_v39 }
  0xa5   : > { %350 = vst [vmem:[%s621_s24 + $0x28] sm:$0xff] %v334_v41 }
  0xa7   : > { %v307_v43 = vpop.f32.mrf.mxu2 }
  0xa8   : > { %v308_v44 = vadd.f32 %v307_v43, %v254_v42  ;;  %v342_v45 = vpop.f32.mrf.mxu3 }
  0xa9   : > { %v343_v46 = vadd.f32 %v342_v45, %v254_v42 }
  0xaa   : > { %355 = vst [vmem:[%s621_s24 + $0x50] sm:$0xff] %v308_v44 }
  0xab   : > { %356 = vst [vmem:[%s621_s24 + $0x58] sm:$0xff] %v343_v46 }
  0xac PF: > { %s13_s14 = sadd.s32 1, %s522_s14   ;;  %s648_s12 = smov %s518_s13 }
  0xad   : > { %p10_p5 = scmp.ge.s32.totalorder %s13_s14, 4   ;;  %s649_s13 = smov %s651_s15 }
  0xaf   :  { %12 = sbr.rel (!%p10_p5) target bundleno = 2 (0x2), region = 62 }

// kernel: attention_forward.5
= control target key start
LH: loop header
LB: loop body
LE: loop exit
PB: predicated region body
PF: predicated region fallthrough
CT: control target
= control target key end

     0   :  { %s1057_s24 = smov 0   ;;  %s1059_s25 = smov 0   ;;  %s1264_s0 = inlined_call_operand.vmem [shape: f32[2,48,256], index: 0, kind: input, shape index: {}]   ;;  %s1265_s1 = inlined_call_operand.vmem [shape: f32[2,48,256], index: 1, kind: input, shape index: {}]   ;;  %s1266_s2 = inlined_call_operand.vmem [shape: f32[2,48,256], index: 2, kind: input, shape index: {}]   ;;  %s1267_s3 = inlined_call_operand.vmem [shape: f32[48,48], index: 3, kind: input, shape index: {}]   ;;  %s1268_s4 = inlined_call_operand.vmem [shape: f32[48,48], index: 4, kind: input, shape index: {}]   ;;  %s1269_s5 = inlined_call_operand.vmem [shape: f32[48,48], index: 5, kind: input, shape index: {}]   ;;  %s1270_s6 = inlined_call_operand.vmem [shape: f32[48,1], index: 6, kind: input, shape index: {}]   ;;  %s1271_s7 = inlined_call_operand.vmem [shape: f32[2,48,256], index: 7, kind: output, shape index: {}]  }
   0x1   :  { %s1061_s26 = smov 0  }
   0x2 LB: > { %s29_s27 = sadd.s32 1, %s1010_s25  ;;  %p908_p0 = scmp.ge.s32.totalorder %s1014_s26, 1  ;;  %s1014_s26 = sphi %s1061_s26, %s17_s26   ;;  %s1010_s25 = sphi %s1059_s25, %s1273_s25   ;;  %s1006_s24 = sphi %s1057_s24, %s1272_s24  }
   0x3   : > { %p31_p1 = scmp.ge.s32.totalorder %s29_s27, 2  ;;  %p292_p2 = scmp.lt.s32.totalorder %s1014_s26, 3 }
   0x5   : > { %s1275_s27 = smov (%p31_p1, %s29_s27), 0  ;;  %p293_p3 = pnand %p908_p0, %p292_p2 }
   0x6   : > { %p351_p4 = scmp.lt.s32.totalorder (!%p293_p3), %s1006_s24, 1 }
   0x7   : > { %296 = sbr.rel (%p293_p3) target bundleno = 232 (0xe8), region = 48 }
   0xc   : > { %s1277_s24 = smov (!%p351_p4, %s1006_s24), 1  ;;  %v411_v12 = vld [vmem:[%s1268_s4 + $0x18] sm:$0xff]  ;;  %vm426_vm0 = vcmask 392192   ;;  %v408_v17 = vld [vmem:[%s1268_s4] sm:$0xff]  ;;  %v409_v31 = vld [vmem:[%s1268_s4 + $0x8] sm:$0xff]  ;;  %v1016_v39 = vmov 0  }
   0xd   : > { %s1075_s28 = smul.u32 96, %s1277_s24  ;;  %v412_v24 = vld [vmem:[%s1268_s4 + $0x20] sm:$0xff]  ;;  %v413_v36 = vld [vmem:[%s1268_s4 + $0x28] sm:$0xff]  ;;  %989 = vset.pattern.permute.xlu0 %v1016_v39  ;;  %990 = vset.pattern.permute.xlu1 %v1016_v39  ;;  %v410_v43 = vld [vmem:[%s1268_s4 + $0x10] sm:$0xff] }
   0xe   : > { %v721_v40 = vld [vmem:[%s1270_s6] sm:$0xff]  ;;  %991 = vset.pattern.permute.xlu2 %v1016_v39  ;;  %v722_v45 = vld [vmem:[%s1270_s6 + $0x8] sm:$0xff]  ;;  %v723_v46 = vld [vmem:[%s1270_s6 + $0x10] sm:$0xff] }
   0xf   : > { %s368_s8 = scalar_lea.vmem %s1265_s1, %s1075_s28  ;;  %s1085_s11 = scalar_lea.vmem %s1264_s0, %s1075_s28  ;;  %729 = vperm.xlu0 %989, %v721_v40   ;;  %v390_v44 = vld [vmem:[%s1267_s3] sm:$0xff]  ;;  %739 = vperm.xlu1 %990, %v723_v46   ;;  %v391_v48 = vld [vmem:[%s1267_s3 + $0x8] sm:$0xff]  ;;  %v724_v49 = vld [vmem:[%s1270_s6 + $0x18] sm:$0xff] }
  0x10   : > { %v424_v0 = vld [vmem:[%s368_s8 + $0x50] sm:$0xff]  ;;  %v425_v1 = vld [vmem:[%s368_s8 + $0x58] sm:$0xff]  ;;  %v422_v2 = vld [vmem:[%s368_s8 + $0x40] sm:$0xff]  ;;  %s1100_s16 = scalar_lea.vmem %s1266_s2, %s1075_s28 }
  0x11   : > { %951 = vmatpush.msra.mxu2 %v424_v0  ;;  %957 = vmatpush.msra.mxu3 %v425_v1  ;;  %v423_v3 = vld [vmem:[%s368_s8 + $0x48] sm:$0xff]  ;;  %v420_v4 = vld [vmem:[%s368_s8 + $0x30] sm:$0xff]  ;;  %v421_v5 = vld [vmem:[%s368_s8 + $0x38] sm:$0xff] }
  0x12   : > { %455 = vmatpush.msra.mxu0 %v424_v0  ;;  %490 = vmatpush.msra.mxu1 %v425_v1  ;;  %v418_v6 = vld [vmem:[%s368_s8 + $0x20] sm:$0xff]  ;;  %v419_v7 = vld [vmem:[%s368_s8 + $0x28] sm:$0xff]  ;;  %v416_v8 = vld [vmem:[%s368_s8 + $0x10] sm:$0xff] }
  0x13   : > { %952 = vmatpush.msra.mxu2 %v422_v2  ;;  %958 = vmatpush.msra.mxu3 %v423_v3  ;;  %v417_v9 = vld [vmem:[%s368_s8 + $0x18] sm:$0xff]  ;;  %v414_v10 = vld [vmem:[%s368_s8] sm:$0xff]  ;;  %v415_v11 = vld [vmem:[%s368_s8 + $0x8] sm:$0xff]  ;;  %s1237_s8 = scalar_lea.vmem %s1271_s7, %s1075_s28 }
  0x14   : > { %456 = vmatpush.msra.mxu0 %v422_v2  ;;  %491 = vmatpush.msra.mxu1 %v423_v3  ;;  %v406_v13 = vld [vmem:[%s1085_s11 + $0x50] sm:$0xff]  ;;  %v407_v14 = vld [vmem:[%s1085_s11 + $0x58] sm:$0xff]  ;;  %v404_v15 = vld [vmem:[%s1085_s11 + $0x40] sm:$0xff] }
  0x15   : > { %953 = vmatpush.msra.mxu2 %v420_v4  ;;  %959 = vmatpush.msra.mxu3 %v421_v5  ;;  %v405_v16 = vld [vmem:[%s1085_s11 + $0x48] sm:$0xff]  ;;  %v402_v18 = vld [vmem:[%s1085_s11 + $0x30] sm:$0xff]  ;;  %v403_v19 = vld [vmem:[%s1085_s11 + $0x38] sm:$0xff] }
  0x16   : > { %457 = vmatpush.msra.mxu0 %v420_v4  ;;  %492 = vmatpush.msra.mxu1 %v421_v5  ;;  %v619_v20 = vld [vmem:[%s1100_s16 + $0x50] sm:$0xff]  ;;  %v620_v21 = vld [vmem:[%s1100_s16 + $0x58] sm:$0xff]  ;;  %v400_v22 = vld [vmem:[%s1085_s11 + $0x20] sm:$0xff] }
  0x17   : > { %954 = vmatpush.msra.mxu2 %v418_v6  ;;  %960 = vmatpush.msra.mxu3 %v419_v7  ;;  %v401_v23 = vld [vmem:[%s1085_s11 + $0x28] sm:$0xff]  ;;  %v617_v25 = vld [vmem:[%s1100_s16 + $0x40] sm:$0xff]  ;;  %v398_v27 = vld [vmem:[%s1085_s11 + $0x10] sm:$0xff] }
  0x18   : > { %458 = vmatpush.msra.mxu0 %v418_v6  ;;  %493 = vmatpush.msra.mxu1 %v419_v7  ;;  %v618_v26 = vld [vmem:[%s1100_s16 + $0x48] sm:$0xff]  ;;  %v399_v28 = vld [vmem:[%s1085_s11 + $0x18] sm:$0xff]  ;;  %v615_v29 = vld [vmem:[%s1100_s16 + $0x30] sm:$0xff] }
  0x19   : > { %955 = vmatpush.msra.mxu2 %v416_v8  ;;  %961 = vmatpush.msra.mxu3 %v417_v9  ;;  %v616_v30 = vld [vmem:[%s1100_s16 + $0x38] sm:$0xff]  ;;  %v396_v32 = vld [vmem:[%s1085_s11] sm:$0xff]  ;;  %v397_v33 = vld [vmem:[%s1085_s11 + $0x8] sm:$0xff] }
  0x1a   : > { %459 = vmatpush.msra.mxu0 %v416_v8  ;;  %494 = vmatpush.msra.mxu1 %v417_v9  ;;  %v613_v34 = vld [vmem:[%s1100_s16 + $0x20] sm:$0xff]  ;;  %v614_v35 = vld [vmem:[%s1100_s16 + $0x28] sm:$0xff]  ;;  %v611_v37 = vld [vmem:[%s1100_s16 + $0x10] sm:$0xff] }
  0x1b   : > { %956 = vmatpush.msra.mxu2 %v414_v10  ;;  %962 = vmatpush.msra.mxu3 %v415_v11  ;;  %v612_v38 = vld [vmem:[%s1100_s16 + $0x18] sm:$0xff]  ;;  %v609_v41 = vld [vmem:[%s1100_s16] sm:$0xff]  ;;  %v610_v42 = vld [vmem:[%s1100_s16 + $0x8] sm:$0xff] }
  0x1c   : > { %916 = vmatmul.msk.f32.vlgmr.msra.gmra.mxu2 %vm426_vm0, %v411_v12  ;;  %922 = vmatmul.msk.f32.vlgmr.msra.gmra.mxu3 %vm426_vm0, %v411_v12  ;;  %v603_v47 = vld [vmem:[%s1269_s5] sm:$0xff]  ;;  %v604_v50 = vld [vmem:[%s1269_s5 + $0x8] sm:$0xff]  ;;  %v392_v52 = vld [vmem:[%s1267_s3 + $0x10] sm:$0xff] }
  0x1d   : > { %543 = vmatpush.msrb.mxu2 %v406_v13  ;;  %578 = vmatpush.msrb.mxu3 %v407_v14  ;;  %v725_v51 = vld [vmem:[%s1270_s6 + $0x20] sm:$0xff]  ;;  %v605_v53 = vld [vmem:[%s1269_s5 + $0x10] sm:$0xff]  ;;  %v726_v54 = vld [vmem:[%s1270_s6 + $0x28] sm:$0xff] }
  0x1e   : > { %460 = vmatpush.msra.mxu0 %v414_v10  ;;  %495 = vmatpush.msra.mxu1 %v415_v11  ;;  %v393_v55 = vld [vmem:[%s1267_s3 + $0x18] sm:$0xff]  ;;  %v394_v57 = vld [vmem:[%s1267_s3 + $0x20] sm:$0xff]  ;;  %v395_v59 = vld [vmem:[%s1267_s3 + $0x28] sm:$0xff] }
  0x1f   : > { %544 = vmatpush.msrb.mxu2 %v404_v15  ;;  %579 = vmatpush.msrb.mxu3 %v405_v16  ;;  %v606_v56 = vld [vmem:[%s1269_s5 + $0x18] sm:$0xff]  ;;  %v607_v58 = vld [vmem:[%s1269_s5 + $0x20] sm:$0xff]  ;;  %v608_v60 = vld [vmem:[%s1269_s5 + $0x28] sm:$0xff] }
  0x20   : > { %913 = vmatmul.msk.f32.vlgmr.msra.gmra.mxu0 %vm426_vm0, %v408_v17  ;;  %919 = vmatmul.msk.f32.vlgmr.msra.gmra.mxu1 %vm426_vm0, %v408_v17 }
  0x21   : > { %545 = vmatpush.msrb.mxu2 %v402_v18  ;;  %580 = vmatpush.msrb.mxu3 %v403_v19 }
  0x22   : > { %649 = vmatpush.msrb.mxu0 %v619_v20  ;;  %684 = vmatpush.msrb.mxu1 %v620_v21 }
  0x23   : > { %546 = vmatpush.msrb.mxu2 %v400_v22  ;;  %581 = vmatpush.msrb.mxu3 %v401_v23 }
  0x24   : > { %917 = vmatmul.msk.f32.gmra.mxu2 %vm426_vm0, %v412_v24  ;;  %923 = vmatmul.msk.f32.gmra.mxu3 %vm426_vm0, %v412_v24 }
  0x25   : > { %650 = vmatpush.msrb.mxu0 %v617_v25  ;;  %685 = vmatpush.msrb.mxu1 %v618_v26 }
  0x26   : > { %547 = vmatpush.msrb.mxu2 %v398_v27  ;;  %582 = vmatpush.msrb.mxu3 %v399_v28 }
  0x27   : > { %651 = vmatpush.msrb.mxu0 %v615_v29  ;;  %686 = vmatpush.msrb.mxu1 %v616_v30 }
  0x28   : > { %914 = vmatmul.msk.f32.gmra.mxu0 %vm426_vm0, %v409_v31  ;;  %920 = vmatmul.msk.f32.gmra.mxu1 %vm426_vm0, %v409_v31 }
  0x29   : > { %548 = vmatpush.msrb.mxu2 %v396_v32  ;;  %583 = vmatpush.msrb.mxu3 %v397_v33 }
  0x2a   : > { %652 = vmatpush.msrb.mxu0 %v613_v34  ;;  %687 = vmatpush.msrb.mxu1 %v614_v35 }
  0x2b   : > { %734 = vperm.xlu0 %989, %v722_v45   ;;  %744 = vperm.xlu1 %990, %v724_v49  }
  0x2c   : > { %918 = vmatmul.msk.f32.gmra.mxu2 %vm426_vm0, %v413_v36  ;;  %924 = vmatmul.msk.f32.gmra.mxu3 %vm426_vm0, %v413_v36 }
  0x2d   : > { %653 = vmatpush.msrb.mxu0 %v611_v37  ;;  %688 = vmatpush.msrb.mxu1 %v612_v38 }
  0x2e   : > { %749 = vperm.xlu2 %991, %v725_v51  }
  0x2f   : > { %654 = vmatpush.msrb.mxu0 %v609_v41  ;;  %689 = vmatpush.msrb.mxu1 %v610_v42 }
  0x30   : > { %915 = vmatmul.msk.f32.gmra.mxu0 %vm426_vm0, %v410_v43  ;;  %921 = vmatmul.msk.f32.gmra.mxu1 %vm426_vm0, %v410_v43 }
  0x34   : > { %925 = vmatmul.msk.f32.vlgmr.msrb.gmra.mxu2 %vm426_vm0, %v390_v44  ;;  %931 = vmatmul.msk.f32.vlgmr.msrb.gmra.mxu3 %vm426_vm0, %v390_v44 }
  0x36   : > { %754 = vperm.xlu2 %991, %v726_v54  }
  0x38   : > { %937 = vmatmul.msk.f32.vlgmr.msrb.gmra.mxu0 %vm426_vm0, %v603_v47  ;;  %943 = vmatmul.msk.f32.vlgmr.msrb.gmra.mxu1 %vm426_vm0, %v603_v47 }
  0x3c   : > { %926 = vmatmul.msk.f32.gmra.mxu2 %vm426_vm0, %v391_v48  ;;  %932 = vmatmul.msk.f32.gmra.mxu3 %vm426_vm0, %v391_v48 }
  0x40   : > { %938 = vmatmul.msk.f32.gmra.mxu0 %vm426_vm0, %v604_v50  ;;  %944 = vmatmul.msk.f32.gmra.mxu1 %vm426_vm0, %v604_v50 }
  0x44   : > { %927 = vmatmul.msk.f32.gmra.mxu2 %vm426_vm0, %v392_v52  ;;  %933 = vmatmul.msk.f32.gmra.mxu3 %vm426_vm0, %v392_v52 }
  0x48   : > { %939 = vmatmul.msk.f32.gmra.mxu0 %vm426_vm0, %v605_v53  ;;  %945 = vmatmul.msk.f32.gmra.mxu1 %vm426_vm0, %v605_v53 }
  0x4c   : > { %928 = vmatmul.msk.f32.gmra.mxu2 %vm426_vm0, %v393_v55  ;;  %934 = vmatmul.msk.f32.gmra.mxu3 %vm426_vm0, %v393_v55 }
  0x50   : > { %940 = vmatmul.msk.f32.gmra.mxu0 %vm426_vm0, %v606_v56  ;;  %946 = vmatmul.msk.f32.gmra.mxu1 %vm426_vm0, %v606_v56 }
  0x54   : > { %929 = vmatmul.msk.f32.gmra.mxu2 %vm426_vm0, %v394_v57  ;;  %935 = vmatmul.msk.f32.gmra.mxu3 %vm426_vm0, %v394_v57 }
  0x58   : > { %941 = vmatmul.msk.f32.gmra.mxu0 %vm426_vm0, %v607_v58  ;;  %947 = vmatmul.msk.f32.gmra.mxu1 %vm426_vm0, %v607_v58 }
  0x5c   : > { %930 = vmatmul.msk.f32.gmra.mxu2 %vm426_vm0, %v395_v59  ;;  %936 = vmatmul.msk.f32.gmra.mxu3 %vm426_vm0, %v395_v59 }
  0x60   : > { %942 = vmatmul.msk.f32.gmra.mxu0 %vm426_vm0, %v608_v60  ;;  %948 = vmatmul.msk.f32.gmra.mxu1 %vm426_vm0, %v608_v60 }
  0x81   : > { %v730_v11 = vpop.permute.xlu0 %729  ;;  %v740_v33 = vpop.permute.xlu1 %739 }
  0x88   : > { %v750_v59 = vpop.permute.xlu2 %749 }
  0x9d   : > { %v462_v61 = vpop.f32.mrf.mxu0  ;;  %v497_v62 = vpop.f32.mrf.mxu1 }
  0x9e   : > { %v735_v26 = vpop.permute.xlu0 %734  ;;  %v745_v48 = vpop.permute.xlu1 %744 }
  0x9f   : > { %v471_v63 = vpop.f32.mrf.mxu2  ;;  %v506_v0 = vpop.f32.mrf.mxu3 }
  0xa5   : > { %v465_v1 = vpop.f32.mrf.mxu0  ;;  %v500_v2 = vpop.f32.mrf.mxu1 }
  0xa7   : > { %v1225_v3 = vpop.f32.mrf.mxu2  ;;  %v1227_v4 = vpop.f32.mrf.mxu3 }
  0xad   : > { %v468_v5 = vpop.f32.mrf.mxu0  ;;  %v503_v6 = vpop.f32.mrf.mxu1 }
  0xaf   : > { %v1229_v7 = vpop.f32.mrf.mxu2  ;;  %v1231_v8 = vpop.f32.mrf.mxu3 }
  0xb5   : > { %v656_v9 = vpop.f32.mrf.mxu0  ;;  %v691_v10 = vpop.f32.mrf.mxu1 }
  0xb7   : > { %v550_v12 = vpop.f32.mrf.mxu2  ;;  %v585_v13 = vpop.f32.mrf.mxu3 }
  0xb8   : > { %v551_v14 = vadd.f32 %v550_v12, %v462_v61  ;;  %v586_v15 = vadd.f32 %v585_v13, %v497_v62 }
  0xba   : > { %v709_v16 = vadd.f32 %v656_v9, %v551_v14  ;;  %v710_v17 = vadd.f32 %v691_v10, %v586_v15 }
  0xbc   : > { %v757_v18 = vadd.f32 %v730_v11, %v709_v16  ;;  %v758_v19 = vadd.f32 %v730_v11, %v710_v17 }
  0xbd   : > { %v659_v20 = vpop.f32.mrf.mxu0  ;;  %v694_v21 = vpop.f32.mrf.mxu1 }
  0xbe   : > { %769 = vst [vmem:[%s1237_s8] sm:$0xff] %v757_v18 }
  0xbf   : > { %770 = vst [vmem:[%s1237_s8 + $0x8] sm:$0xff] %v758_v19  ;;  %v553_v22 = vpop.f32.mrf.mxu2  ;;  %v588_v23 = vpop.f32.mrf.mxu3 }
  0xc0   : > { %v554_v24 = vadd.f32 %v553_v22, %v465_v1  ;;  %v589_v25 = vadd.f32 %v588_v23, %v500_v2 }
  0xc2   : > { %v711_v27 = vadd.f32 %v659_v20, %v554_v24  ;;  %v712_v28 = vadd.f32 %v694_v21, %v589_v25 }
  0xc4   : > { %v759_v29 = vadd.f32 %v735_v26, %v711_v27  ;;  %v760_v30 = vadd.f32 %v735_v26, %v712_v28 }
  0xc5   : > { %v662_v31 = vpop.f32.mrf.mxu0  ;;  %v697_v32 = vpop.f32.mrf.mxu1 }
  0xc6   : > { %771 = vst [vmem:[%s1237_s8 + $0x10] sm:$0xff] %v759_v29 }
  0xc7   : > { %772 = vst [vmem:[%s1237_s8 + $0x18] sm:$0xff] %v760_v30  ;;  %v556_v34 = vpop.f32.mrf.mxu2  ;;  %v591_v35 = vpop.f32.mrf.mxu3 }
  0xc8   : > { %v557_v36 = vadd.f32 %v556_v34, %v468_v5  ;;  %v592_v37 = vadd.f32 %v591_v35, %v503_v6 }
  0xca   : > { %v713_v38 = vadd.f32 %v662_v31, %v557_v36  ;;  %v714_v39 = vadd.f32 %v697_v32, %v592_v37 }
  0xcc   : > { %v761_v40 = vadd.f32 %v740_v33, %v713_v38  ;;  %v762_v41 = vadd.f32 %v740_v33, %v714_v39 }
  0xcd   : > { %v665_v42 = vpop.f32.mrf.mxu0  ;;  %v700_v43 = vpop.f32.mrf.mxu1 }
  0xce   : > { %773 = vst [vmem:[%s1237_s8 + $0x20] sm:$0xff] %v761_v40 }
  0xcf   : > { %774 = vst [vmem:[%s1237_s8 + $0x28] sm:$0xff] %v762_v41  ;;  %v559_v44 = vpop.f32.mrf.mxu2  ;;  %v594_v45 = vpop.f32.mrf.mxu3 }
  0xd0   : > { %v560_v46 = vadd.f32 %v559_v44, %v471_v63  ;;  %v595_v47 = vadd.f32 %v594_v45, %v506_v0 }
  0xd2   : > { %v715_v49 = vadd.f32 %v665_v42, %v560_v46  ;;  %v716_v50 = vadd.f32 %v700_v43, %v595_v47 }
  0xd4   : > { %v763_v51 = vadd.f32 %v745_v48, %v715_v49  ;;  %v764_v52 = vadd.f32 %v745_v48, %v716_v50 }
  0xd5   : > { %v668_v53 = vpop.f32.mrf.mxu0  ;;  %v703_v54 = vpop.f32.mrf.mxu1 }
  0xd6   : > { %775 = vst [vmem:[%s1237_s8 + $0x30] sm:$0xff] %v763_v51 }
  0xd7   : > { %776 = vst [vmem:[%s1237_s8 + $0x38] sm:$0xff] %v764_v52  ;;  %v562_v55 = vpop.f32.mrf.mxu2  ;;  %v597_v56 = vpop.f32.mrf.mxu3 }
  0xd8   : > { %v563_v57 = vadd.f32 %v562_v55, %v1225_v3  ;;  %v598_v58 = vadd.f32 %v597_v56, %v1227_v4  ;;  %v755_v4 = vpop.permute.xlu2 %754 }
  0xda   : > { %v717_v60 = vadd.f32 %v668_v53, %v563_v57  ;;  %v718_v61 = vadd.f32 %v703_v54, %v598_v58 }
  0xdc   : > { %v765_v62 = vadd.f32 %v750_v59, %v717_v60  ;;  %v766_v63 = vadd.f32 %v750_v59, %v718_v61 }
  0xdd   : > { %v671_v0 = vpop.f32.mrf.mxu0  ;;  %v706_v1 = vpop.f32.mrf.mxu1 }
  0xde   : > { %777 = vst [vmem:[%s1237_s8 + $0x40] sm:$0xff] %v765_v62 }
  0xdf   : > { %778 = vst [vmem:[%s1237_s8 + $0x48] sm:$0xff] %v766_v63  ;;  %v565_v2 = vpop.f32.mrf.mxu2  ;;  %v600_v5 = vpop.f32.mrf.mxu3 }
  0xe0   : > { %v566_v6 = vadd.f32 %v565_v2, %v1229_v7  ;;  %v601_v9 = vadd.f32 %v600_v5, %v1231_v8 }
  0xe2   : > { %v719_v3 = vadd.f32 %v671_v0, %v566_v6  ;;  %v720_v10 = vadd.f32 %v706_v1, %v601_v9 }
  0xe4   : > { %v767_v11 = vadd.f32 %v755_v4, %v719_v3  ;;  %v768_v12 = vadd.f32 %v755_v4, %v720_v10 }
  0xe6   : > { %779 = vst [vmem:[%s1237_s8 + $0x50] sm:$0xff] %v767_v11 }
  0xe7   : > { %780 = vst [vmem:[%s1237_s8 + $0x58] sm:$0xff] %v768_v12 }
  0xe8 PF: > { %s17_s26 = sadd.s32 1, %s1014_s26   ;;  %s1272_s24 = smov %s1010_s25 }
  0xe9   : > { %p14_p5 = scmp.ge.s32.totalorder %s17_s26, 4   ;;  %s1273_s25 = smov %s1275_s27 }
  0xeb   :  { %16 = sbr.rel (!%p14_p5) target bundleno = 2 (0x2), region = 84 }

// kernel: attention_forward.6
= control target key start
LH: loop header
LB: loop body
LE: loop exit
PB: predicated region body
PF: predicated region fallthrough
CT: control target
= control target key end

     0   :  { %8 = vsyncpa [#allocation3], 0  ;;  %s1115_s0 = inlined_call_operand.vmem [shape: f32[2,48,256], index: 0, kind: input, shape index: {}]   ;;  %s1116_s1 = inlined_call_operand.vmem [shape: f32[2], index: 1, kind: input, shape index: {}]   ;;  %s1117_s2 = inlined_call_operand.vmem [shape: f32[3], index: 2, kind: input, shape index: {}]   ;;  %s1118_s3 = inlined_call_operand.vmem [shape: f32[2,16,256], index: 3, kind: output, shape index: {}]  }
   0x1   :  { %9 = vsyncpa [#allocation5], 0  ;;  %s916_s12 = smov 0  }
   0x2 LB: > { %s752_s13 = sadd.s32 4294967295, %s891_s12   ;;  %p754_p0 = scmp.ge.s32.totalorder %s891_s12, 1  ;;  %s891_s12 = sphi %s916_s12, %s15_s12  }
   0x3   : > { %p114_p1 = scmp.lt.s32.totalorder %s891_s12, 3  ;;  %s126_s16 = sshll.u32 %s1116_s1, 4  ;;  %s127_s16 = int_to_ptr.vmem [resolvable:$true] %s126_s16 }
   0x4   : > { %p808_p3 = scmp.eq.s32.totalorder %s752_s13, 0  ;;  %s136_s19 = sshll.u32 %s1117_s2, 4  ;;  %s137_s19 = int_to_ptr.vmem [resolvable:$true] %s136_s19 }
   0x5   : > { %p115_p2 = pnand %p754_p0, %p114_p1  ;;  %s893_s20 = smov [#allocation2]  }
   0x6   : > { %s894_s21 = smov [#allocation4]  }
   0x7   : > { %p801_p4 = pneg %p115_p2 }
   0x8   : > { %157 = sbr.rel (%p115_p2) target bundleno = 1143 (0x477), region = 32 }
   0x9   : > { %p802_p5 = pnand %p808_p3, %p801_p4 }
   0xb   : > { %804 = dma.vmem_to_smem (!%p802_p5), %s127_s16, 16, %s893_s20, [#allocation3]  }
   0xc   : > { %807 = dma.vmem_to_smem (!%p802_p5), %s137_s19, 16, %s894_s21, [#allocation5]  }
   0xd   : > { %882 = dma.done.wait (%p808_p3), [#allocation3], 16  }
   0xe   : > { %884 = vsyncadd (%p808_p3), [#allocation3], 4294967280 }
   0xf   : > { %886 = dma.done.wait (%p808_p3), [#allocation5], 16  }
  0x10   : > { %888 = vsyncadd (%p808_p3), [#allocation5], 4294967280 }
  0x11   : > { %169 = sfence }
  0x12   : > { %p188_p6 = scmp.lt.s32.totalorder %s752_s13, 1  ;;  %s242_s26 = sld [smem:[#allocation2]]  ;;  %v198_v32 = vlaneseq  ;;  %vm287_vm9 = vcmask 64512  }
  0x13   : > { %s1037_s27 = sld [smem:[#allocation4]] }
  0x14   : > { %s1120_s13 = smov (!%p188_p6, %s752_s13), 1  ;;  %v947_v33 = vand.u32 127, %v198_v32  ;;  %s1039_s28 = sld [smem:[#allocation4 + $0x1]] }
  0x15   : > { %s792_s22 = smul.u32 96, %s1120_s13  ;;  %s1041_s29 = sld [smem:[#allocation4 + $0x2]] }
  0x16   : > { %vm322_vm6 = vcmp.eq.s32.totalorder %v947_v33, 4  ;;  %vm304_vm7 = vcmp.eq.s32.totalorder %v947_v33, 2  ;;  %vm285_vm8 = vcmp.eq.s32.totalorder %v947_v33, 0  ;;  %vm340_vm10 = vcmp.eq.s32.totalorder %v947_v33, 6  ;;  %s791_s30 = sshll.u32 %s1120_s13, 5  ;;  %s776_s7 = sld [smem:[#allocation2 + $0x1]] }
  0x17   : > { %s941_s25 = scalar_lea.vmem %s1115_s0, %s792_s22  ;;  %vm313_vm11 = vcmp.eq.s32.totalorder %v947_v33, 3  ;;  %vm295_vm12 = vcmp.eq.s32.totalorder %v947_v33, 1  ;;  %vm331_vm13 = vcmp.eq.s32.totalorder %v947_v33, 5  ;;  %vm349_vm14 = vcmp.eq.s32.totalorder %v947_v33, 7  ;;  %s1060_s6 = scalar_lea.vmem %s1118_s3, %s791_s30 }
  0x18   : > { %v202_v0 = vld [vmem:[%s941_s25 + $0x10] sm:$0xff]  ;;  %v203_v1 = vld [vmem:[%s941_s25 + $0x18] sm:$0xff]  ;;  %v200_v4 = vld [vmem:[%s941_s25] sm:$0xff]  ;;  %v283_v36 = vstv %s242_s26 }
  0x19   : > { %v224_v2 = vmul.f32 %v202_v0, %v202_v0  ;;  %v225_v3 = vmul.f32 %v203_v1, %v203_v1  ;;  %v201_v5 = vld [vmem:[%s941_s25 + $0x8] sm:$0xff]  ;;  %v206_v7 = vmul.f32 %v200_v4, %v200_v4  ;;  %v994_v56 = vld [vmem:[%s941_s25 + $0x40] sm:$0xff]  ;;  %v1004_v61 = vld [vmem:[%s941_s25 + $0x30] sm:$0xff] }
  0x1a   : > { %v207_v8 = vmul.f32 %v201_v5, %v201_v5  ;;  %v997_v57 = vld [vmem:[%s941_s25 + $0x48] sm:$0xff]  ;;  %v466_v58 = vmul.f32 %v994_v56, %v994_v56  ;;  %v1007_v62 = vld [vmem:[%s941_s25 + $0x38] sm:$0xff]  ;;  %v448_v63 = vmul.f32 %v1004_v61, %v1004_v61 }
  0x1b   : > { %v226_v6 = vadd.f32 %v225_v3, %v224_v2  ;;  %v467_v59 = vmul.f32 %v997_v57, %v997_v57 }
  0x1c   : > { %v208_v9 = vadd.f32 %v207_v8, %v206_v7  ;;  %v895_v7 = vmov 0.0  }
  0x1d   : > { %227 = vadd.xlane.f32.xlu0 %v226_v6  ;;  %v468_v60 = vadd.f32 %v467_v59, %v466_v58 }
  0x25   : > { %209 = vadd.xlane.f32.xlu0 %v208_v9 }
  0x90   : > { %v228_v10 = vpop.xlane.xlu0 %227 }
  0x91   : > { %v229_v11 = vmax.f32 %v228_v10, 1e-24 }
  0x93   : > { %823 = vrsqrt.f32 %v229_v11  ;;  %vm236_vm1 = vweird.f32 %v229_v11 }
  0x98   : > { %v210_v12 = vpop.xlane.xlu0 %209 }
  0x99   : > { %v824_v13 = vpop.eup %823  ;;  %v211_v14 = vmax.f32 %v210_v12, 1e-24 }
  0x9a   : > { %v231_v15 = vmul.f32 %v824_v13, %v229_v11  ;;  %vm237_vm0 = vweird.f32 %v824_v13 }
  0x9b   : > { %825 = vrsqrt.f32 %v211_v14  ;;  %vm238_vm2 = vmor %vm236_vm1, %vm237_vm0  ;;  %vm218_vm4 = vweird.f32 %v211_v14 }
  0x9c   : > { %v232_v16 = vmul.f32 %v824_v13, %v231_v15 }
  0x9e   : > { %v233_v17 = vmul.f32 0.5, %v232_v16 }
  0xa0   : > { %v234_v18 = vsub.f32 1.5, %v233_v17 }
  0xa1   : > { %v826_v19 = vpop.eup %825 }
  0xa2   : > { %v213_v20 = vmul.f32 %v826_v19, %v211_v14  ;;  %v235_v21 = vmul.f32 %v824_v13, %v234_v18  ;;  %vm219_vm3 = vweird.f32 %v826_v19 }
  0xa3   : > { %vm220_vm5 = vmor %vm218_vm4, %vm219_vm3 }
  0xa4   : > { %v214_v22 = vmul.f32 %v826_v19, %v213_v20  ;;  %v239_v23 = vsel %vm238_vm2, %v824_v13, %v235_v21 }
  0xa5   : > { %v240_v24 = vmul.f32 %v239_v23, %v202_v0  ;;  %v241_v25 = vmul.f32 %v239_v23, %v203_v1  ;;  %v449_v0 = vmul.f32 %v1007_v62, %v1007_v62 }
  0xa6   : > { %v215_v26 = vmul.f32 0.5, %v214_v22 }
  0xa7   : > { %258 = vmatpush.xpose.msra.mxu0 %v240_v24  ;;  %278 = vmatpush.xpose.msra.mxu1 %v241_v25  ;;  %v450_v1 = vadd.f32 %v449_v0, %v448_v63  ;;  %v372_v0 = vstv %s1037_s27 }
  0xa8   : > { %v216_v27 = vsub.f32 1.5, %v215_v26 }
  0xaa   : > { %v217_v28 = vmul.f32 %v826_v19, %v216_v27 }
  0xac   : > { %v221_v29 = vsel %vm220_vm5, %v826_v19, %v217_v28 }
  0xad   : > { %v222_v30 = vmul.f32 %v221_v29, %v200_v4  ;;  %v223_v31 = vmul.f32 %v221_v29, %v201_v5 }
  0xaf   : > { %259 = vmatmul.f32.vlgmr.msra.gmra.mxu0 %v222_v30  ;;  %279 = vmatmul.f32.vlgmr.msra.gmra.mxu1 %v223_v31 }
 0x12c   : > { %v260_v34 = vpop.f32.mrf.mxu0  ;;  %v280_v35 = vpop.f32.mrf.mxu1 }
 0x12d   : > { %v281_v37 = vadd.f32 %v280_v35, %v260_v34 }
 0x12f   : > { %v952_v38 = vmul.f32 %v283_v36, %v281_v37 }
 0x131   : > { %v323_v39 = vsel %vm322_vm6, %v952_v38, 0.0  ;;  %v305_v40 = vsel %vm304_vm7, %v952_v38, 0.0  ;;  %v286_v41 = vsel %vm285_vm8, %v952_v38, 0.0  ;;  %v341_v45 = vsel %vm340_vm10, %v952_v38, 0.0 }
 0x132   : > { %v324_v42 = vsel %vm287_vm9, %v323_v39, 0.0  ;;  %v306_v43 = vsel %vm287_vm9, %v305_v40, 0.0  ;;  %v288_v44 = vsel %vm287_vm9, %v286_v41, 0.0  ;;  %v314_v46 = vsel %vm313_vm11, %v952_v38, 0.0 }
 0x133   : > { %325 = vadd.xlane.f32.xlu0 %v324_v42  ;;  %307 = vadd.xlane.f32.xlu2 %v306_v43  ;;  %v296_v47 = vsel %vm295_vm12, %v952_v38, 0.0  ;;  %v342_v48 = vsel %vm287_vm9, %v341_v45, 0.0  ;;  %v315_v49 = vsel %vm287_vm9, %v314_v46, 0.0  ;;  %v332_v51 = vsel %vm331_vm13, %v952_v38, 0.0  ;;  %v204_v45 = vld [vmem:[%s941_s25 + $0x20] sm:$0xff]  ;;  %v205_v46 = vld [vmem:[%s941_s25 + $0x28] sm:$0xff] }
 0x134   : > { %289 = vadd.xlane.f32.xlu1 %v288_v44  ;;  %v297_v50 = vsel %vm287_vm9, %v296_v47, 0.0  ;;  %v333_v52 = vsel %vm287_vm9, %v332_v51, 0.0  ;;  %v358_v53 = vsel %vm287_vm9, %v952_v38, -inf  ;;  %v350_v54 = vsel %vm349_vm14, %v952_v38, 0.0  ;;  %415 = vmatpush.msra.mxu2 %v204_v45 }
 0x135   : > { %v351_v55 = vsel %vm287_vm9, %v350_v54, 0.0  ;;  %435 = vmatpush.msra.mxu3 %v205_v46 }
 0x13b   : > { %343 = vadd.xlane.f32.xlu0 %v342_v48  ;;  %316 = vadd.xlane.f32.xlu2 %v315_v49 }
 0x13c   : > { %298 = vadd.xlane.f32.xlu1 %v297_v50 }
 0x143   : > { %334 = vadd.xlane.f32.xlu2 %v333_v52 }
 0x144   : > { %359 = vmax.xlane.f32.xlu1 %v358_v53 }
 0x14b   : > { %469 = vadd.xlane.f32.xlu2 %v468_v60 }
 0x14c   : > { %352 = vadd.xlane.f32.xlu1 %v351_v55 }
 0x153   : > { %451 = vadd.xlane.f32.xlu2 %v450_v1  ;;  %v383_v1 = vstv %s1039_s28 }
 0x1a6   : > { %v308_v2 = vpop.xlane.xlu2 %307  ;;  %v326_v5 = vpop.xlane.xlu0 %325 }
 0x1a7   : > { %v290_v3 = vpop.xlane.xlu1 %289  ;;  %vm309_vm0 = vcmp.gt.f32.partialorder %v308_v2, %v952_v38  ;;  %vm327_vm3 = vcmp.gt.f32.partialorder %v326_v5, %v952_v38 }
 0x1a8   : > { %vm291_vm15 = vcmp.gt.f32.partialorder %v290_v3, %v952_v38  ;;  %v766_v11 = vsel %vm309_vm0, 1.0, %v895_v7  ;;  %v768_v16 = vsel %vm327_vm3, 1.0, %v895_v7 }
 0x1a9   : > { %v764_v8 = vsel %vm291_vm15, 1.0, %v895_v7 }
 0x1ae   : > { %v317_v4 = vpop.xlane.xlu2 %316  ;;  %v344_v20 = vpop.xlane.xlu0 %343 }
 0x1af   : > { %v299_v6 = vpop.xlane.xlu1 %298  ;;  %vm318_vm2 = vcmp.gt.f32.partialorder %v317_v4, %v952_v38  ;;  %vm345_vm5 = vcmp.gt.f32.partialorder %v344_v20, %v952_v38 }
 0x1b0   : > { %vm300_vm1 = vcmp.gt.f32.partialorder %v299_v6, %v952_v38  ;;  %v767_v13 = vsel %vm318_vm2, 1.0, %v895_v7  ;;  %v770_v24 = vsel %vm345_vm5, 1.0, %v895_v7  ;;  %v394_v6 = vstv %s1041_s29 }
 0x1b1   : > { %v765_v9 = vsel %vm300_vm1, 1.0, %v895_v7 }
 0x1b2   : > { %v303_v10 = vadd.f32 %v765_v9, %v764_v8 }
 0x1b4   : > { %v312_v12 = vadd.f32 %v766_v11, %v303_v10 }
 0x1b6   : > { %v335_v14 = vpop.xlane.xlu2 %334  ;;  %v321_v15 = vadd.f32 %v767_v13, %v312_v12 }
 0x1b7   : > { %vm336_vm4 = vcmp.gt.f32.partialorder %v335_v14, %v952_v38  ;;  %v360_v17 = vpop.xlane.xlu1 %359 }
 0x1b8   : > { %v330_v18 = vadd.f32 %v768_v16, %v321_v15  ;;  %v361_v19 = vsub.f32 %v952_v38, %v360_v17  ;;  %v769_v21 = vsel %vm336_vm4, 1.0, %v895_v7 }
 0x1ba   : > { %v362_v22 = vmul.f32 1.442695, %v361_v19  ;;  %v339_v23 = vadd.f32 %v769_v21, %v330_v18 }
 0x1bc   : > { %827 = vpow2.f32 %v362_v22  ;;  %v348_v26 = vadd.f32 %v770_v24, %v339_v23 }
 0x1be   : > { %v470_v37 = vpop.xlane.xlu2 %469 }
 0x1bf   : > { %v353_v25 = vpop.xlane.xlu1 %352 }
 0x1c0   : > { %vm354_vm15 = vcmp.gt.f32.partialorder %v353_v25, %v952_v38  ;;  %v471_v38 = vmax.f32 %v470_v37, 1e-24 }
 0x1c1   : > { %v771_v27 = vsel %vm354_vm15, 1.0, %v895_v7 }
 0x1c2   : > { %v357_v28 = vadd.f32 %v771_v27, %v348_v26  ;;  %v828_v29 = vpop.eup %827  ;;  %829 = vrsqrt.f32 %v471_v38  ;;  %vm478_vm3 = vweird.f32 %v471_v38 }
 0x1c4   : > { %vm375_vm0 = vcmp.lt.f32.partialorder %v357_v28, 5.0  ;;  %vm364_vm1 = vcmp.lt.f32.partialorder %v357_v28, 4.0  ;;  %vm386_vm2 = vcmp.lt.f32.partialorder %v357_v28, 6.0 }
 0x1c5   : > { %v376_v30 = vsel %vm375_vm0, %v828_v29, 0.0  ;;  %v365_v31 = vsel %vm364_vm1, %v828_v29, 0.0  ;;  %v387_v35 = vsel %vm386_vm2, %v828_v29, 0.0 }
 0x1c6   : > { %v377_v32 = vsel %vm287_vm9, %v376_v30, 0.0  ;;  %v366_v34 = vsel %vm287_vm9, %v365_v31, 0.0  ;;  %v388_v36 = vsel %vm287_vm9, %v387_v35, 0.0  ;;  %v452_v50 = vpop.xlane.xlu2 %451 }
 0x1c7   : > { %378 = vadd.xlane.f32.xlu1 %v377_v32  ;;  %367 = vadd.xlane.f32.xlu0 %v366_v34  ;;  %v453_v51 = vmax.f32 %v452_v50, 1e-24 }
 0x1c8   : > { %v830_v39 = vpop.eup %829 }
 0x1c9   : > { %v473_v40 = vmul.f32 %v830_v39, %v471_v38  ;;  %vm479_vm4 = vweird.f32 %v830_v39  ;;  %831 = vrsqrt.f32 %v453_v51  ;;  %vm460_vm15 = vweird.f32 %v453_v51 }
 0x1ca   : > { %vm480_vm5 = vmor %vm478_vm3, %vm479_vm4 }
 0x1cb   : > { %v474_v41 = vmul.f32 %v830_v39, %v473_v40 }
 0x1cd   : > { %v475_v42 = vmul.f32 0.5, %v474_v41 }
 0x1cf   : > { %389 = vadd.xlane.f32.xlu0 %v388_v36  ;;  %v476_v43 = vsub.f32 1.5, %v475_v42  ;;  %v832_v54 = vpop.eup %831 }
 0x1d0   : > { %v455_v55 = vmul.f32 %v832_v54, %v453_v51  ;;  %vm461_vm0 = vweird.f32 %v832_v54 }
 0x1d1   : > { %v477_v44 = vmul.f32 %v830_v39, %v476_v43  ;;  %vm462_vm1 = vmor %vm460_vm15, %vm461_vm0 }
 0x1d2   : > { %v456_v59 = vmul.f32 %v832_v54, %v455_v55 }
 0x1d3   : > { %v481_v47 = vsel %vm480_vm5, %v830_v39, %v477_v44 }
 0x1d4   : > { %v482_v48 = vmul.f32 %v481_v47, %v994_v56  ;;  %v483_v49 = vmul.f32 %v481_v47, %v997_v57  ;;  %v457_v2 = vmul.f32 0.5, %v456_v59 }
 0x1d6   : > { %500 = vmatpush.xpose.msrb.mxu2 %v482_v48  ;;  %520 = vmatpush.xpose.msrb.mxu3 %v483_v49  ;;  %v458_v9 = vsub.f32 1.5, %v457_v2 }
 0x1d8   : > { %v459_v13 = vmul.f32 %v832_v54, %v458_v9 }
 0x1da   : > { %v463_v14 = vsel %vm462_vm1, %v832_v54, %v459_v13 }
 0x1db   : > { %v464_v15 = vmul.f32 %v463_v14, %v1004_v61  ;;  %v465_v16 = vmul.f32 %v463_v14, %v1007_v62  ;;  %v525_v61 = vstv %s776_s7  ;;  %v446_v14 = vld [vmem:[%s941_s25 + $0x50] sm:$0xff] }
 0x1dc   : > { %648 = vmatpush.msrb.mxu0 %v446_v14 }
 0x23a   : > { %v379_v52 = vpop.xlane.xlu1 %378  ;;  %v368_v53 = vpop.xlane.xlu0 %367 }
 0x23b   : > { %833 = vrcp.f32 %v379_v52 }
 0x23c   : > { %835 = vrcp.f32 %v368_v53 }
 0x241   : > { %v834_v56 = vpop.eup %833 }
 0x242   : > { %v836_v57 = vpop.eup %835  ;;  %v390_v58 = vpop.xlane.xlu0 %389  ;;  %v382_v60 = vmul.f32 %v834_v56, %v376_v30 }
 0x243   : > { %837 = vrcp.f32 %v390_v58  ;;  %v371_v63 = vmul.f32 %v836_v57, %v365_v31 }
 0x244   : > { %v384_v4 = vmul.f32 %v383_v1, %v382_v60 }
 0x245   : > { %v373_v3 = vmul.f32 %v372_v0, %v371_v63 }
 0x247   : > { %v385_v10 = vadd.f32 %v384_v4, %v373_v3 }
 0x249   : > { %v838_v5 = vpop.eup %837 }
 0x24a   : > { %v393_v8 = vmul.f32 %v838_v5, %v387_v35 }
 0x24c   : > { %v395_v11 = vmul.f32 %v394_v6, %v393_v8 }
 0x24e   : > { %v396_v12 = vadd.f32 %v395_v11, %v385_v10 }
 0x250   : > { %774 = vmatmul.msk.f32.vlgmr.msra.gmra.mxu2 %vm287_vm9, %v396_v12  ;;  %775 = vmatmul.msk.f32.vlgmr.msra.gmra.mxu3 %vm287_vm9, %v396_v12 }
 0x258   : > { %501 = vmatmul.f32.vlgmr.msrb.gmra.mxu2 %v464_v15  ;;  %521 = vmatmul.f32.vlgmr.msrb.gmra.mxu3 %v465_v16 }
 0x2d3   : > { %v417_v17 = vpop.f32.mrf.mxu2  ;;  %v437_v18 = vpop.f32.mrf.mxu3 }
 0x2d4   : > { %440 = vst [vmem:[%s1060_s6] sm:$0xff] %v417_v17 }
 0x2d5   : > { %441 = vst [vmem:[%s1060_s6 + $0x8] sm:$0xff] %v437_v18 }
 0x2db   : > { %v502_v19 = vpop.f32.mrf.mxu2  ;;  %v522_v20 = vpop.f32.mrf.mxu3 }
 0x2dc   : > { %v523_v21 = vadd.f32 %v522_v20, %v502_v19 }
 0x2de   : > { %v526_v62 = vmul.f32 %v525_v61, %v523_v21 }
 0x2e0   : > { %v543_v22 = vsel %vm304_vm7, %v526_v62, 0.0  ;;  %v535_v23 = vsel %vm295_vm12, %v526_v62, 0.0  ;;  %v527_v24 = vsel %vm285_vm8, %v526_v62, 0.0  ;;  %v559_v28 = vsel %vm322_vm6, %v526_v62, 0.0 }
 0x2e1   : > { %v544_v25 = vsel %vm287_vm9, %v543_v22, 0.0  ;;  %v536_v26 = vsel %vm287_vm9, %v535_v23, 0.0  ;;  %v528_v27 = vsel %vm287_vm9, %v527_v24, 0.0  ;;  %v551_v29 = vsel %vm313_vm11, %v526_v62, 0.0 }
 0x2e2   : > { %545 = vadd.xlane.f32.xlu0 %v544_v25  ;;  %537 = vadd.xlane.f32.xlu2 %v536_v26  ;;  %v591_v30 = vsel %vm287_vm9, %v526_v62, -inf  ;;  %v560_v31 = vsel %vm287_vm9, %v559_v28, 0.0  ;;  %v552_v32 = vsel %vm287_vm9, %v551_v29, 0.0  ;;  %v583_v34 = vsel %vm349_vm14, %v526_v62, 0.0 }
 0x2e3   : > { %529 = vadd.xlane.f32.xlu1 %v528_v27  ;;  %v575_v35 = vsel %vm340_vm10, %v526_v62, 0.0  ;;  %v567_v36 = vsel %vm331_vm13, %v526_v62, 0.0  ;;  %v584_v37 = vsel %vm287_vm9, %v583_v34, 0.0 }
 0x2e4   : > { %v576_v38 = vsel %vm287_vm9, %v575_v35, 0.0  ;;  %v568_v39 = vsel %vm287_vm9, %v567_v36, 0.0 }
 0x2ea   : > { %592 = vmax.xlane.f32.xlu0 %v591_v30  ;;  %561 = vadd.xlane.f32.xlu2 %v560_v31 }
 0x2eb   : > { %553 = vadd.xlane.f32.xlu1 %v552_v32 }
 0x2f2   : > { %585 = vadd.xlane.f32.xlu0 %v584_v37  ;;  %577 = vadd.xlane.f32.xlu2 %v576_v38 }
 0x2f3   : > { %569 = vadd.xlane.f32.xlu1 %v568_v39 }
 0x355   : > { %v546_v40 = vpop.xlane.xlu0 %545  ;;  %v538_v41 = vpop.xlane.xlu2 %537 }
 0x356   : > { %v530_v42 = vpop.xlane.xlu1 %529  ;;  %vm539_vm6 = vcmp.gt.f32.partialorder %v538_v41, %v526_v62  ;;  %vm547_vm8 = vcmp.gt.f32.partialorder %v546_v40, %v526_v62 }
 0x357   : > { %vm531_vm7 = vcmp.gt.f32.partialorder %v530_v42, %v526_v62  ;;  %v778_v43 = vsel %vm539_vm6, 1.0, %v895_v7  ;;  %v779_v48 = vsel %vm547_vm8, 1.0, %v895_v7 }
 0x358   : > { %v777_v44 = vsel %vm531_vm7, 1.0, %v895_v7 }
 0x359   : > { %v542_v33 = vadd.f32 %v778_v43, %v777_v44 }
 0x35b   : > { %v550_v51 = vadd.f32 %v779_v48, %v542_v33 }
 0x35d   : > { %v593_v45 = vpop.xlane.xlu0 %592  ;;  %v562_v46 = vpop.xlane.xlu2 %561 }
 0x35e   : > { %v554_v47 = vpop.xlane.xlu1 %553  ;;  %v594_v50 = vsub.f32 %v526_v62, %v593_v45  ;;  %vm563_vm11 = vcmp.gt.f32.partialorder %v562_v46, %v526_v62 }
 0x35f   : > { %vm555_vm10 = vcmp.gt.f32.partialorder %v554_v47, %v526_v62  ;;  %v781_v55 = vsel %vm563_vm11, 1.0, %v895_v7 }
 0x360   : > { %v780_v49 = vsel %vm555_vm10, 1.0, %v895_v7  ;;  %v595_v53 = vmul.f32 1.442695, %v594_v50 }
 0x361   : > { %v558_v52 = vadd.f32 %v780_v49, %v550_v51 }
 0x362   : > { %839 = vpow2.f32 %v595_v53 }
 0x363   : > { %v566_v58 = vadd.f32 %v781_v55, %v558_v52 }
 0x365   : > { %v578_v54 = vpop.xlane.xlu2 %577  ;;  %v586_v56 = vpop.xlane.xlu0 %585 }
 0x366   : > { %v570_v57 = vpop.xlane.xlu1 %569  ;;  %vm579_vm12 = vcmp.gt.f32.partialorder %v578_v54, %v526_v62  ;;  %vm587_vm14 = vcmp.gt.f32.partialorder %v586_v56, %v526_v62 }
 0x367   : > { %vm571_vm13 = vcmp.gt.f32.partialorder %v570_v57, %v526_v62  ;;  %v783_v63 = vsel %vm579_vm12, 1.0, %v895_v7  ;;  %v784_v3 = vsel %vm587_vm14, 1.0, %v895_v7 }
 0x368   : > { %v782_v59 = vsel %vm571_vm13, 1.0, %v895_v7  ;;  %v840_v5 = vpop.eup %839  ;;  %v447_v7 = vld [vmem:[%s941_s25 + $0x58] sm:$0xff] }
 0x369   : > { %v574_v60 = vadd.f32 %v782_v59, %v566_v58  ;;  %668 = vmatpush.msrb.mxu1 %v447_v7 }
 0x36b   : > { %v582_v2 = vadd.f32 %v783_v63, %v574_v60 }
 0x36d   : > { %v590_v4 = vadd.f32 %v784_v3, %v582_v2 }
 0x36f   : > { %vm619_vm2 = vcmp.lt.f32.partialorder %v590_v4, 6.0  ;;  %vm608_vm3 = vcmp.lt.f32.partialorder %v590_v4, 5.0  ;;  %vm597_vm4 = vcmp.lt.f32.partialorder %v590_v4, 4.0 }
 0x370   : > { %v620_v8 = vsel %vm619_vm2, %v840_v5, 0.0  ;;  %v609_v9 = vsel %vm608_vm3, %v840_v5, 0.0  ;;  %v598_v10 = vsel %vm597_vm4, %v840_v5, 0.0 }
 0x371   : > { %v621_v11 = vsel %vm287_vm9, %v620_v8, 0.0  ;;  %v610_v12 = vsel %vm287_vm9, %v609_v9, 0.0  ;;  %v599_v13 = vsel %vm287_vm9, %v598_v10, 0.0 }
 0x372   : > { %622 = vadd.xlane.f32.xlu0 %v621_v11  ;;  %611 = vadd.xlane.f32.xlu2 %v610_v12 }
 0x373   : > { %600 = vadd.xlane.f32.xlu1 %v599_v13 }
 0x3e5   : > { %v623_v15 = vpop.xlane.xlu0 %622  ;;  %v612_v16 = vpop.xlane.xlu2 %611 }
 0x3e6   : > { %841 = vrcp.f32 %v623_v15  ;;  %v601_v17 = vpop.xlane.xlu1 %600 }
 0x3e7   : > { %843 = vrcp.f32 %v612_v16 }
 0x3e8   : > { %845 = vrcp.f32 %v601_v17 }
 0x3ec   : > { %v842_v18 = vpop.eup %841 }
 0x3ed   : > { %v844_v19 = vpop.eup %843  ;;  %v626_v21 = vmul.f32 %v842_v18, %v620_v8 }
 0x3ee   : > { %v846_v20 = vpop.eup %845  ;;  %v615_v61 = vmul.f32 %v844_v19, %v609_v9 }
 0x3ef   : > { %v604_v62 = vmul.f32 %v846_v20, %v598_v10  ;;  %v628_v24 = vmul.f32 %v626_v21, %v394_v6 }
 0x3f0   : > { %v617_v22 = vmul.f32 %v615_v61, %v383_v1 }
 0x3f1   : > { %v606_v23 = vmul.f32 %v604_v62, %v372_v0 }
 0x3f3   : > { %v618_v25 = vadd.f32 %v617_v22, %v606_v23 }
 0x3f5   : > { %v629_v26 = vadd.f32 %v628_v24, %v618_v25 }
 0x3f7   : > { %787 = vmatmul.msk.f32.vlgmr.msrb.gmra.mxu0 %vm287_vm9, %v629_v26  ;;  %788 = vmatmul.msk.f32.vlgmr.msrb.gmra.mxu1 %vm287_vm9, %v629_v26 }
 0x474   : > { %v650_v27 = vpop.f32.mrf.mxu0  ;;  %v670_v28 = vpop.f32.mrf.mxu1 }
 0x475   : > { %673 = vst [vmem:[%s1060_s6 + $0x10] sm:$0xff] %v650_v27 }
 0x476   : > { %674 = vst [vmem:[%s1060_s6 + $0x18] sm:$0xff] %v670_v28 }
 0x477 PF: > { %s15_s12 = sadd.s32 1, %s891_s12  }
 0x478   : > { %p12_p7 = scmp.ge.s32.totalorder %s15_s12, 4  }
 0x47a   :  { %14 = sbr.rel (!%p12_p7) target bundleno = 2 (0x2), region = 71 }
 0x47f   :  { %696 = vsyncpa [#allocation3], 1 }
 0x480   :  { %698 = vsyncpa [#allocation3 + $0x1], 1 }
 0x481   :  { %699 = vsyncpa [#allocation5], 1 }

// kernel: attention_forward.7
= control target key start
LH: loop header
LB: loop body
LE: loop exit
PB: predicated region body
PF: predicated region fallthrough
CT: control target
= control target key end

     0   :  { %s464_s12 = smov 0   ;;  %s466_s13 = smov 0   ;;  %s509_s0 = inlined_call_operand.vmem [shape: f32[2,16,256], index: 0, kind: input, shape index: {}]   ;;  %s510_s1 = inlined_call_operand.vmem [shape: f32[16,16], index: 1, kind: input, shape index: {}]   ;;  %s511_s2 = inlined_call_operand.vmem [shape: f32[16,1], index: 2, kind: input, shape index: {}]   ;;  %s512_s3 = inlined_call_operand.vmem [shape: f32[2,16,256], index: 3, kind: output, shape index: {}]  }
   0x1   :  { %s468_s14 = smov 0  }
   0x2 LB: > { %s25_s15 = sadd.s32 1, %s437_s13  ;;  %p376_p0 = scmp.ge.s32.totalorder %s441_s14, 1  ;;  %s441_s14 = sphi %s468_s14, %s13_s14   ;;  %s437_s13 = sphi %s466_s13, %s514_s13   ;;  %s433_s12 = sphi %s464_s12, %s513_s12  }
   0x3   : > { %p27_p1 = scmp.ge.s32.totalorder %s25_s15, 2  ;;  %p158_p2 = scmp.lt.s32.totalorder %s441_s14, 3 }
   0x5   : > { %s516_s15 = smov (%p27_p1, %s25_s15), 0  ;;  %p159_p3 = pnand %p376_p0, %p158_p2 }
   0x6   : > { %p191_p4 = scmp.lt.s32.totalorder (!%p159_p3), %s433_s12, 1 }
   0x7   : > { %162 = sbr.rel (%p159_p3) target bundleno = 156 (0x9c), region = 32 }
   0xc   : > { %v216_v0 = vld [vmem:[%s511_s2] sm:$0xff]  ;;  %v443_v1 = vmov 0   ;;  %s518_s12 = smov (!%p191_p4, %s433_s12), 1  ;;  %vm228_vm0 = vcmask 130048   ;;  %v215_v7 = vld [vmem:[%s510_s1 + $0x8] sm:$0xff] }
   0xd   : > { %418 = vset.pattern.permute.xlu0 %v443_v1  ;;  %s387_s18 = sshll.u32 %s518_s12, 5  ;;  %v214_v6 = vld [vmem:[%s510_s1] sm:$0xff]  ;;  %v217_v8 = vld [vmem:[%s511_s2 + $0x8] sm:$0xff] }
   0xe   : > { %220 = vperm.xlu0 %418, %v216_v0   ;;  %s198_s21 = scalar_lea.vmem %s509_s0, %s387_s18  ;;  %s208_s30 = scalar_lea.vmem %s512_s3, %s387_s18 }
   0xf   : > { %v212_v2 = vld [vmem:[%s198_s21 + $0x10] sm:$0xff]  ;;  %v213_v3 = vld [vmem:[%s198_s21 + $0x18] sm:$0xff]  ;;  %v210_v4 = vld [vmem:[%s198_s21] sm:$0xff] }
  0x10   : > { %249 = vmatpush.msra.mxu0 %v212_v2  ;;  %389 = vmatpush.msra.mxu2 %v212_v2  ;;  %v211_v5 = vld [vmem:[%s198_s21 + $0x8] sm:$0xff] }
  0x11   : > { %272 = vmatpush.msra.mxu1 %v213_v3  ;;  %391 = vmatpush.msra.mxu3 %v213_v3 }
  0x12   : > { %250 = vmatpush.msra.mxu0 %v210_v4  ;;  %390 = vmatpush.msra.mxu2 %v210_v4 }
  0x13   : > { %273 = vmatpush.msra.mxu1 %v211_v5  ;;  %392 = vmatpush.msra.mxu3 %v211_v5 }
  0x14   : > { %381 = vmatmul.msk.f32.vlgmr.msra.gmra.mxu0 %vm228_vm0, %v214_v6  ;;  %382 = vmatmul.msk.f32.vlgmr.msra.gmra.mxu2 %vm228_vm0, %v215_v7 }
  0x15   : > { %383 = vmatmul.msk.f32.vlgmr.msra.gmra.mxu1 %vm228_vm0, %v214_v6  ;;  %384 = vmatmul.msk.f32.vlgmr.msra.gmra.mxu3 %vm228_vm0, %v215_v7 }
  0x16   : > { %225 = vperm.xlu0 %418, %v217_v8  }
  0x80   : > { %v221_v9 = vpop.permute.xlu0 %220 }
  0x88   : > { %v226_v14 = vpop.permute.xlu0 %225 }
  0x91   : > { %v252_v10 = vpop.f32.mrf.mxu0 }
  0x92   : > { %v253_v11 = vadd.f32 %v252_v10, %v221_v9  ;;  %v275_v12 = vpop.f32.mrf.mxu1 }
  0x93   : > { %v276_v13 = vadd.f32 %v275_v12, %v221_v9 }
  0x94   : > { %281 = vst [vmem:[%s208_s30] sm:$0xff] %v253_v11 }
  0x95   : > { %282 = vst [vmem:[%s208_s30 + $0x8] sm:$0xff] %v276_v13 }
  0x97   : > { %v255_v15 = vpop.f32.mrf.mxu2 }
  0x98   : > { %v256_v16 = vadd.f32 %v255_v15, %v226_v14  ;;  %v278_v17 = vpop.f32.mrf.mxu3 }
  0x99   : > { %v279_v18 = vadd.f32 %v278_v17, %v226_v14 }
  0x9a   : > { %283 = vst [vmem:[%s208_s30 + $0x10] sm:$0xff] %v256_v16 }
  0x9b   : > { %284 = vst [vmem:[%s208_s30 + $0x18] sm:$0xff] %v279_v18 }
  0x9c PF: > { %s13_s14 = sadd.s32 1, %s441_s14   ;;  %s513_s12 = smov %s437_s13 }
  0x9d   : > { %p10_p5 = scmp.ge.s32.totalorder %s13_s14, 4   ;;  %s514_s13 = smov %s516_s15 }
  0x9f   :  { %12 = sbr.rel (!%p10_p5) target bundleno = 2 (0x2), region = 62 }

</bundles_post_ra>
